<compile_context>
chip_gen: v5e
topology: v5e:2x2
jax: 0.10.0
libtpu: 0.0.40
codegen_flags: <defaults>
</compile_context>

<pallas_src>
import functools
import math

import jax
import jax.numpy as jnp
from jax.experimental import pallas as pl
from jax.experimental.pallas import tpu as pltpu


def _round_up(x, m):
    return ((x + m - 1) // m) * m


def _device_kind():
    try:
        return jax.devices()[0].device_kind.lower()
    except Exception:
        return ""


@functools.lru_cache(maxsize=None)
def _single_buffer_supported():
    """Probe (once) whether this JAX build accepts pl.Buffered(1) on a BlockSpec
    with a constant index_map, mixed with default-buffered specs.  If not, fall
    back to default double-buffering (costs ~150 KiB of never-used VMEM)."""
    def _k(x_ref, w_ref, o_ref):
        o_ref[...] = x_ref[...] + w_ref[...]

    try:
        out = pl.pallas_call(
            _k,
            out_shape=jax.ShapeDtypeStruct((16, 128), jnp.float32),
            grid=(2,),
            in_specs=[
                pl.BlockSpec((8, 128), lambda i: (i, 0)),
                pl.BlockSpec((8, 128), lambda i: (0, 0),
                             pipeline_mode=pl.Buffered(1)),
            ],
            out_specs=pl.BlockSpec((8, 128), lambda i: (i, 0)),
        )(jnp.zeros((16, 128), jnp.float32), jnp.ones((8, 128), jnp.float32))
        return bool(jnp.all(jax.block_until_ready(out) == 1.0))
    except Exception:
        return False


def _resident_spec(a):
    """VMEM-resident spec (constant index_map) for small weights / biases."""
    idx = lambda i: (0,) * a.ndim
    if _single_buffer_supported():
        return pl.BlockSpec(a.shape, idx, pipeline_mode=pl.Buffered(1))
    return pl.BlockSpec(a.shape, idx)


# ---------------------------------------------------------------------------
# Pallas kernel: PPmodel MLP (BatchNorms pre-folded into the Linear weights)
#   h1 = relu(x  @ W1 + b1)
#   h2 = relu(h1 @ W2 + b2)
#   h3 = relu(h2 @ W3 + b3)
#   o  =      h3 @ W4 + b4          (W4/b4 zero-padded to a multiple of 128 lanes)
# Weights bf16, activations bf16 on the MXU, f32 accumulation.  The bias/ReLU
# epilogue of the hidden layers runs in bf16 on v6e/v7x (bf16-capable VPU) and
# in f32 on v5e/v4.  Output is stored as bf16 (lane-dense 128-wide stores).
# ---------------------------------------------------------------------------
def _make_ppmodel_kernel(bf16_epilogue):
    def kernel(x_ref, w1_ref, b1_ref, w2_ref, b2_ref, w3_ref, b3_ref,
               w4_ref, b4_ref, o_ref):
        def hidden(h, w_ref, b_ref):
            acc = jnp.dot(h, w_ref[...], preferred_element_type=jnp.float32)
            if bf16_epilogue:
                # cast the f32 accumulator once, then bias+ReLU in bf16 (VPU 2x)
                return jnp.maximum(acc.astype(jnp.bfloat16) + b_ref[...], 0)
            # f32 epilogue (v5e has no bf16 VALU), single cast at the end
            return jnp.maximum(acc + b_ref[...], 0.0).astype(jnp.bfloat16)

        h = hidden(x_ref[...], w1_ref, b1_ref)
        h = hidden(h, w2_ref, b2_ref)
        h = hidden(h, w3_ref, b3_ref)
        o = jnp.dot(h, w4_ref[...], preferred_element_type=jnp.float32) + b4_ref[...]
        o_ref[...] = o.astype(o_ref.dtype)

    return kernel


def ppmodel_pallas(x, params, *, tile_n, bf16_epilogue, vmem_limit_bytes):
    """x: [n, fea_pad] bf16 (n % tile_n == 0).  Returns bf16 [n, out_pad]."""
    n, fea = x.shape
    w1, b1, w2, b2, w3, b3, w4, b4 = params
    out_dim = w4.shape[1]
    assert n % tile_n == 0, "pad the point dimension to a multiple of tile_n"
    assert out_dim % 128 == 0, "pad the output dim to a multiple of 128 lanes"

    return pl.pallas_call(
        _make_ppmodel_kernel(bf16_epilogue),
        out_shape=jax.ShapeDtypeStruct((n, out_dim), jnp.bfloat16),
        grid=(n // tile_n,),
        in_specs=[
            pl.BlockSpec((tile_n, fea), lambda i: (i, 0)),
            _resident_spec(w1), _resident_spec(b1),
            _resident_spec(w2), _resident_spec(b2),
            _resident_spec(w3), _resident_spec(b3),
            _resident_spec(w4), _resident_spec(b4),
        ],
        out_specs=pl.BlockSpec((tile_n, out_dim), lambda i: (i, 0)),
        compiler_params=pltpu.CompilerParams(
            dimension_semantics=("parallel",),       # shards point tiles across v7x TCs
            vmem_limit_bytes=vmem_limit_bytes,       # generation-sized (set by caller)
        ),
    )(x, w1, b1, w2, b2, w3, b3, w4, b4)


def _choose_tile_n(n):
    # >=2 grid steps whenever possible (keeps both v7x TensorCores busy), tiles a
    # multiple of 256, capped at 4096 points/step: large enough to amortize the
    # ~0.35 us per-grid-step overhead, small enough that double-buffered IO plus
    # the f32 intermediates stay well inside the 48 MiB v7x scoped-VMEM budget.
    half = _round_up(max(1, (n + 1) // 2), 256)
    return int(max(256, min(4096, half)))


# ---------------------------------------------------------------------------
# Module
# ---------------------------------------------------------------------------
class PolarNetDynamicVoxelFeatureExtractorPallas:
    def __init__(self, grid_size, point_cloud_range, average_points,
                 num_input_features, num_output_features, fea_compre=None,
                 voxel_label_enc=None, seed=0):
        self.grid_size = list(grid_size)
        self.point_cloud_range = list(point_cloud_range)
        self.average_points = average_points
        self.num_input_features = num_input_features
        self.num_output_features = num_output_features
        self.fea_compre = fea_compre
        self.voxel_label_enc = voxel_label_enc
        self.voxel_size = [
            (point_cloud_range[3] - point_cloud_range[0]) / grid_size[0],
            (point_cloud_range[4] - point_cloud_range[1]) / grid_size[1],
            (point_cloud_range[5] - point_cloud_range[2]) / grid_size[2],
        ]
        self.fea_dim = num_input_features + 2 + 8
        self.fea_dim_pad = _round_up(self.fea_dim, 8)             # 14 -> 16
        self.out_dim_pad = _round_up(num_output_features, 128)    # lane-dense stores

        kind = _device_kind()
        # bf16 bias/ReLU epilogue only where the VPU is bf16-capable (v6e/v7x);
        # v5e/v4 keep the f32 epilogue (bf16 VALU would be emulated there).
        self.bf16_epilogue = ("v6" in kind) or ("v7" in kind)
        # scoped-VMEM limit per generation: 64 MiB on 128-MiB-VMEM chips
        # (v5e/v6e/v4), 48 MiB on v7x (64 MiB physical per TensorCore).
        self.vmem_limit_bytes = (48 if "v7" in kind else 64) * 1024 * 1024

        self._init_params(seed)

    # ----- deterministic parameter init + exact eval-mode BN folding --------
    def _init_params(self, seed):
        eps = 1e-5
        key = jax.random.PRNGKey(seed)
        dims = [self.fea_dim, 64, 128, 256, self.num_output_features]

        def bn(k, d):
            k1, k2, k3, k4 = jax.random.split(k, 4)
            gamma = 1.0 + 0.1 * jax.random.normal(k1, (d,), jnp.float32)
            beta = 0.05 * jax.random.normal(k2, (d,), jnp.float32)
            mean = 0.05 * jax.random.normal(k3, (d,), jnp.float32)
            var = 1.0 + 0.1 * jax.random.uniform(k4, (d,), jnp.float32)
            return gamma, beta, mean, var

        def lin(k, din, dout):
            k1, k2 = jax.random.split(k)
            w = 0.05 * jax.random.normal(k1, (din, dout), jnp.float32)
            b = 0.05 * jax.random.normal(k2, (dout,), jnp.float32)
            return w, b

        ks = jax.random.split(key, 16)
        # raw params (same shapes as the PyTorch module)
        g0, t0, m0, v0 = bn(ks[0], dims[0])          # BatchNorm1d(fea_dim)
        w1, b1 = lin(ks[1], dims[0], dims[1])
        g1, t1, m1, v1 = bn(ks[2], dims[1])
        w2, b2 = lin(ks[3], dims[1], dims[2])
        g2, t2, m2, v2 = bn(ks[4], dims[2])
        w3, b3 = lin(ks[5], dims[2], dims[3])
        g3, t3, m3, v3 = bn(ks[6], dims[3])
        w4, b4 = lin(ks[7], dims[3], dims[4])

        s0 = g0 / jnp.sqrt(v0 + eps)
        sh0 = t0 - m0 * s0                            # BN0: x*s0 + sh0
        s1 = g1 / jnp.sqrt(v1 + eps)
        s2 = g2 / jnp.sqrt(v2 + eps)
        s3 = g3 / jnp.sqrt(v3 + eps)

        # fold BN0 and BN1 into Linear1
        w1_eff = (s0[:, None] * w1) * s1[None, :]
        b1_eff = sh0 @ (w1 * s1[None, :]) + b1 * s1 + t1 - m1 * s1
        # fold BN2 into Linear2, BN3 into Linear3
        w2_eff = w2 * s2[None, :]
        b2_eff = b2 * s2 + t2 - m2 * s2
        w3_eff = w3 * s3[None, :]
        b3_eff = b3 * s3 + t3 - m3 * s3

        # pad W1 input rows (zero rows pair with zero input columns -> exact)
        w1_eff = jnp.pad(w1_eff, ((0, self.fea_dim_pad - dims[0]), (0, 0)))
        # pad the final layer to a lane-dense (multiple of 128) output width
        w4_p = jnp.pad(w4, ((0, 0), (0, self.out_dim_pad - dims[4])))
        b4_p = jnp.pad(b4, ((0, self.out_dim_pad - dims[4]),))

        # weights bf16 (MXU-native); hidden biases in the epilogue dtype,
        # final bias in f32 (added to the f32 accumulator before the bf16 store)
        hb = jnp.bfloat16 if self.bf16_epilogue else jnp.float32
        self.params = (
            w1_eff.astype(jnp.bfloat16), b1_eff[None, :].astype(hb),
            w2_eff.astype(jnp.bfloat16), b2_eff[None, :].astype(hb),
            w3_eff.astype(jnp.bfloat16), b3_eff[None, :].astype(hb),
            w4_p.astype(jnp.bfloat16), b4_p[None, :].astype(jnp.float32),
        )

        if self.fea_compre is not None:
            wc, bc = lin(ks[8], self.num_output_features, self.fea_compre)
            self.compress_params = (wc, bc)
        else:
            self.compress_params = None

    # ----- forward -----------------------------------------------------------
    def forward(self, points, batch_size):
        """points: [N, 1 + num_input_features] = [batch_idx, x, y, z, extras...]"""
        gs = self.grid_size
        vs = jnp.asarray(self.voxel_size, jnp.float32)
        pcr = jnp.asarray(self.point_cloud_range, jnp.float32)

        # --- cart2cylind + voxelize (original point order, for returned vcoors)
        x, y, z = points[:, 1], points[:, 2], points[:, 3]
        rho = jnp.sqrt(x * x + y * y)
        phi = jnp.arctan2(y, x)
        points_cyl = jnp.stack([rho, phi, z], axis=1)

        # cylindrical grid; clamp => valid_flag is all-true (as in the reference)
        v = jnp.floor((points_cyl - pcr[:3]) / vs).astype(jnp.int32)
        v = jnp.clip(v, 0, jnp.asarray(gs, jnp.int32) - 1)
        bs_idx = points[:, 0].astype(jnp.int32)
        point_vcoors = jnp.concatenate([bs_idx[:, None], v], axis=1)  # [N,4]

        # unique over (bs, v_rho, v_phi)  (v_z forced constant in the reference)
        num_pillars = batch_size * gs[0] * gs[1]
        pid = bs_idx * (gs[0] * gs[1]) + v[:, 0] * gs[1] + v[:, 1]

        # --- sort points by pillar id once: sorted segment reductions lower to
        #     much better TPU code than the general scatter path, and the same
        #     sort is reused for the mean features and the final pooling.
        order = jnp.argsort(pid)
        pid_s = pid[order]
        pts_s = points[order]
        cyl_s = points_cyl[order]
        v_s = v[order]

        # --- raw per-point features [rho, phi, z, x, y, extras] (sorted order)
        pf = jnp.concatenate([cyl_s, pts_s[:, 1:3], pts_s[:, 4:]], axis=1)

        # --- prepare_input_feature (sorted scatter_mean over pillars, gathered back)
        ones = jnp.ones((pf.shape[0],), jnp.float32)
        cnt = jax.ops.segment_sum(ones, pid_s, num_segments=num_pillars,
                                  indices_are_sorted=True)
        sum5 = jax.ops.segment_sum(pf[:, :5], pid_s, num_segments=num_pillars,
                                   indices_are_sorted=True)
        mean5 = sum5 / jnp.maximum(cnt, 1.0)[:, None]
        nor_pc = pf[:, :5] - mean5[pid_s]

        # voxel centers: v is stored as [v_rho, v_phi, v_z] (reverse_coors=False),
        # so index i pairs directly with voxel_size[i] and point_cloud_range[i].
        centers = (v_s.astype(jnp.float32) + 0.5) * vs + pcr[:3]
        center_to_point = pf[:, :3] - centers

        feat = jnp.concatenate([pf, nor_pc, center_to_point], axis=1)  # [N, fea_dim]
        assert feat.shape[1] == self.fea_dim

        # --- PPmodel MLP (Pallas kernel) --------------------------------------
        # pad points to a tile multiple, pad features 14->16, hand off in bf16.
        n = feat.shape[0]
        tile_n = _choose_tile_n(n)
        n_pad = _round_up(n, tile_n)
        feat_pad = jnp.pad(
            feat, ((0, n_pad - n), (0, self.fea_dim_pad - self.fea_dim))
        ).astype(jnp.bfloat16)
        # TODO(synk): fully fuse the per-pillar max/mean pooling into the kernel
        # (sorted points + scalar-prefetched per-tile pillar ranges accumulating
        # into a VMEM-resident [num_pillars, C] output) — segment-max over
        # dynamic-length runs has no cheap static-shape in-kernel form, so the
        # pooled reduction stays in XLA (sorted segment ops, bf16 data) for now.
        pt_out = ppmodel_pallas(feat_pad, self.params, tile_n=tile_n,
                                bf16_epilogue=self.bf16_epilogue,
                                vmem_limit_bytes=self.vmem_limit_bytes)
        pt_out = pt_out[:n, :self.num_output_features]           # bf16, sorted order

        # --- per-pillar pooling (sorted scatter_mean / scatter_max) ------------
        if self.average_points:
            # keep the sum accumulation in f32 (bf16 per-point values, f32 adds)
            pooled = jax.ops.segment_sum(pt_out.astype(jnp.float32), pid_s,
                                         num_segments=num_pillars,
                                         indices_are_sorted=True)
            pooled = pooled / jnp.maximum(cnt, 1.0)[:, None]
        else:
            pooled = jax.ops.segment_max(pt_out, pid_s, num_segments=num_pillars,
                                         indices_are_sorted=True)
            pooled = pooled.astype(jnp.float32)
        pooled = jnp.where(cnt[:, None] > 0, pooled, 0.0)  # empty pillars stay zero

        if self.fea_compre is not None:
            wc, bc = self.compress_params
            pooled = jnp.maximum(pooled @ wc + bc, 0.0)

        # --- dense BEV, NCHW -------------------------------------------------
        bev = pooled.reshape(batch_size, gs[0], gs[1], -1)
        bev = jnp.transpose(bev, (0, 3, 1, 2))  # [B, C, grid_rho, grid_phi]

        # TODO(synk): voxelize_labels (torch.unique + majority vote over a dynamic
        # #voxels) has no static-shape Pallas equivalent; skipped (voxel_label_enc=None).
        return {
            "voxel_features": bev,
            "point_vcoors": point_vcoors,
            "input_shape": self.grid_size,
            # dense per-pillar point counts (reference returns counts of the
            # non-empty unique voxels only, which is a dynamic shape)
            "num_points_in_voxel": cnt,
        }


# ---------------------------------------------------------------------------
if __name__ == "__main__":
    key = jax.random.PRNGKey(0)
    k1, k2, k3 = jax.random.split(key, 3)

    batch_size = 2
    num_points = 500                    # not a tile multiple -> exercises padding
    num_input_features = 4              # x, y, z, intensity
    num_output_features = 64
    grid_size = [16, 16, 8]             # rho, phi, z bins
    point_cloud_range = [0.0, -math.pi, -3.0, 10.0, math.pi, 3.0]

    xyz = jax.random.uniform(k1, (num_points, 3), jnp.float32,
                             minval=-6.0, maxval=6.0)
    intensity = jax.random.uniform(k2, (num_points, 1), jnp.float32)
    bidx = (jnp.arange(num_points) >= num_points // 2).astype(jnp.float32)[:, None]
    points = jnp.concatenate([bidx, xyz, intensity], axis=1)  # [N, 5]

    extractor = PolarNetDynamicVoxelFeatureExtractorPallas(
        grid_size=grid_size,
        point_cloud_range=point_cloud_range,
        average_points=False,               # scatter_max pooling
        num_input_features=num_input_features,
        num_output_features=num_output_features,
        fea_compre=None,
        voxel_label_enc=None,
        seed=0,
    )

    out = extractor.forward(points, batch_size)
    bev = jax.block_until_ready(out["voxel_features"])
    assert bev.shape == (batch_size, num_output_features, grid_size[0], grid_size[1])
    assert bool(jnp.all(jnp.isfinite(bev)))
    print("KERNEL_OK")
</pallas_src>

<mosaic_0001>
module attributes {stable_mosaic.version = 11 : i64} {
  func.func @_k(%arg0: i32, %arg1: memref<8x128xf32, #tpu.memory_space<vmem>>, %arg2: memref<8x128xf32, #tpu.memory_space<vmem>>, %arg3: memref<8x128xf32, #tpu.memory_space<vmem>>) attributes {dimension_semantics = [#tpu.dimension_semantics<arbitrary>], iteration_bounds = array<i64: 2>, scalar_prefetch = 0 : i64, scratch_operands = 0 : i64, tpu.core_type = #tpu.core_type<tc>, window_params = [{transform_indices = @transform_0, window_bounds = array<i64: 8, 128>}, {pipeline_mode = #tpu.pipeline_mode<synchronous>, transform_indices = @transform_1, window_bounds = array<i64: 8, 128>}, {transform_indices = @transform_2, window_bounds = array<i64: 8, 128>}]} {
    %c0 = arith.constant 0 : index
    %c0_0 = arith.constant 0 : index
    %0 = vector.load %arg1[%c0, %c0_0] : memref<8x128xf32, #tpu.memory_space<vmem>>, vector<8x128xf32>
    %c0_1 = arith.constant 0 : index
    %c0_2 = arith.constant 0 : index
    %1 = vector.load %arg2[%c0_1, %c0_2] : memref<8x128xf32, #tpu.memory_space<vmem>>, vector<8x128xf32>
    %2 = arith.addf %0, %1 : vector<8x128xf32>
    %c0_3 = arith.constant 0 : index
    %c0_4 = arith.constant 0 : index
    %3 = vector.load %arg3[%c0_3, %c0_4] : memref<8x128xf32, #tpu.memory_space<vmem>>, vector<8x128xf32>
    tpu.vector_store %arg3[%c0_3, %c0_4], %2 {strides = array<i32>} : memref<8x128xf32, #tpu.memory_space<vmem>>, vector<8x128xf32>,
    return
  }
  func.func @transform_0(%arg0: i32) -> (i32, i32) {
    %c0_i32 = arith.constant 0 : i32
    %c0_i32_0 = arith.constant 0 : i32
    return %arg0, %c0_i32 : i32, i32
  }
  func.func @transform_1(%arg0: i32) -> (i32, i32) {
    %c0_i32 = arith.constant 0 : i32
    %c0_i32_0 = arith.constant 0 : i32
    %c0_i32_1 = arith.constant 0 : i32
    return %c0_i32, %c0_i32_0 : i32, i32
  }
  func.func @transform_2(%arg0: i32) -> (i32, i32) {
    %c0_i32 = arith.constant 0 : i32
    %c0_i32_0 = arith.constant 0 : i32
    return %arg0, %c0_i32 : i32, i32
  }
}

module attributes {stable_mosaic.version = 11 : i64} {
  func.func @kernel(%arg0: i32, %arg1: memref<256x16xbf16, #tpu.memory_space<vmem>>, %arg2: memref<16x64xbf16, #tpu.memory_space<vmem>>, %arg3: memref<1x64xf32, #tpu.memory_space<vmem>>, %arg4: memref<64x128xbf16, #tpu.memory_space<vmem>>, %arg5: memref<1x128xf32, #tpu.memory_space<vmem>>, %arg6: memref<128x256xbf16, #tpu.memory_space<vmem>>, %arg7: memref<1x256xf32, #tpu.memory_space<vmem>>, %arg8: memref<256x128xbf16, #tpu.memory_space<vmem>>, %arg9: memref<1x128xf32, #tpu.memory_space<vmem>>, %arg10: memref<256x128xbf16, #tpu.memory_space<vmem>>) attributes {dimension_semantics = [#tpu.dimension_semantics<parallel>], iteration_bounds = array<i64: 2>, scalar_prefetch = 0 : i64, scratch_operands = 0 : i64, tpu.core_type = #tpu.core_type<tc>, window_params = [{transform_indices = @transform_0, window_bounds = array<i64: 256, 16>}, {pipeline_mode = #tpu.pipeline_mode<synchronous>, transform_indices = @transform_1, window_bounds = array<i64: 16, 64>}, {pipeline_mode = #tpu.pipeline_mode<synchronous>, transform_indices = @transform_2, window_bounds = array<i64: 1, 64>}, {pipeline_mode = #tpu.pipeline_mode<synchronous>, transform_indices = @transform_3, window_bounds = array<i64: 64, 128>}, {pipeline_mode = #tpu.pipeline_mode<synchronous>, transform_indices = @transform_4, window_bounds = array<i64: 1, 128>}, {pipeline_mode = #tpu.pipeline_mode<synchronous>, transform_indices = @transform_5, window_bounds = array<i64: 128, 256>}, {pipeline_mode = #tpu.pipeline_mode<synchronous>, transform_indices = @transform_6, window_bounds = array<i64: 1, 256>}, {pipeline_mode = #tpu.pipeline_mode<synchronous>, transform_indices = @transform_7, window_bounds = array<i64: 256, 128>}, {pipeline_mode = #tpu.pipeline_mode<synchronous>, transform_indices = @transform_8, window_bounds = array<i64: 1, 128>}, {transform_indices = @transform_9, window_bounds = array<i64: 256, 128>}]} {
    %c0 = arith.constant 0 : index
    %c0_0 = arith.constant 0 : index
    %0 = vector.load %arg1[%c0, %c0_0] : memref<256x16xbf16, #tpu.memory_space<vmem>>, vector<256x16xbf16>
    %c0_1 = arith.constant 0 : index
    %c0_2 = arith.constant 0 : index
    %1 = vector.load %arg2[%c0_1, %c0_2] : memref<16x64xbf16, #tpu.memory_space<vmem>>, vector<16x64xbf16>
    %cst = arith.constant dense<0.000000e+00> : vector<256x64xf32>
    %2 = tpu.matmul %0, %1, %cst {dimension_numbers = #tpu.dot_dimension_numbers<[1], [0], [0], [1], [0, 0, 1, 1], [], []>} : vector<256x16xbf16>, vector<16x64xbf16>, vector<256x64xf32> -> vector<256x64xf32>
    %c0_3 = arith.constant 0 : index
    %c0_4 = arith.constant 0 : index
    %3 = vector.load %arg3[%c0_3, %c0_4] : memref<1x64xf32, #tpu.memory_space<vmem>>, vector<1x64xf32>
    %4 = vector.broadcast %3 : vector<1x64xf32> to vector<256x64xf32>
    %5 = arith.addf %2, %4 : vector<256x64xf32>
    %cst_5 = arith.constant 0.000000e+00 : f32
    %6 = vector.broadcast %cst_5 : f32 to vector<256x64xf32>
    %7 = arith.maximumf %5, %6 : vector<256x64xf32>
    %8 = arith.truncf %7 : vector<256x64xf32> to vector<256x64xbf16>
    %c0_6 = arith.constant 0 : index
    %c0_7 = arith.constant 0 : index
    %9 = vector.load %arg4[%c0_6, %c0_7] : memref<64x128xbf16, #tpu.memory_space<vmem>>, vector<64x128xbf16>
    %cst_8 = arith.constant dense<0.000000e+00> : vector<256x128xf32>
    %10 = tpu.matmul %8, %9, %cst_8 {dimension_numbers = #tpu.dot_dimension_numbers<[1], [0], [0], [1], [0, 0, 1, 1], [], []>} : vector<256x64xbf16>, vector<64x128xbf16>, vector<256x128xf32> -> vector<256x128xf32>
    %c0_9 = arith.constant 0 : index
    %c0_10 = arith.constant 0 : index
    %11 = vector.load %arg5[%c0_9, %c0_10] : memref<1x128xf32, #tpu.memory_space<vmem>>, vector<1x128xf32>
    %12 = vector.broadcast %11 : vector<1x128xf32> to vector<256x128xf32>
    %13 = arith.addf %10, %12 : vector<256x128xf32>
    %cst_11 = arith.constant 0.000000e+00 : f32
    %14 = vector.broadcast %cst_11 : f32 to vector<256x128xf32>
    %15 = arith.maximumf %13, %14 : vector<256x128xf32>
    %16 = arith.truncf %15 : vector<256x128xf32> to vector<256x128xbf16>
    %c0_12 = arith.constant 0 : index
    %c0_13 = arith.constant 0 : index
    %17 = vector.load %arg6[%c0_12, %c0_13] : memref<128x256xbf16, #tpu.memory_space<vmem>>, vector<128x256xbf16>
    %cst_14 = arith.constant dense<0.000000e+00> : vector<256x256xf32>
    %18 = tpu.matmul %16, %17, %cst_14 {dimension_numbers = #tpu.dot_dimension_numbers<[1], [0], [0], [1], [0, 0, 1, 1], [], []>} : vector<256x128xbf16>, vector<128x256xbf16>, vector<256x256xf32> -> vector<256x256xf32>
    %c0_15 = arith.constant 0 : index
    %c0_16 = arith.constant 0 : index
    %19 = vector.load %arg7[%c0_15, %c0_16] : memref<1x256xf32, #tpu.memory_space<vmem>>, vector<1x256xf32>
    %20 = vector.broadcast %19 : vector<1x256xf32> to vector<256x256xf32>
    %21 = arith.addf %18, %20 : vector<256x256xf32>
    %cst_17 = arith.constant 0.000000e+00 : f32
    %22 = vector.broadcast %cst_17 : f32 to vector<256x256xf32>
    %23 = arith.maximumf %21, %22 : vector<256x256xf32>
    %24 = arith.truncf %23 : vector<256x256xf32> to vector<256x256xbf16>
    %c0_18 = arith.constant 0 : index
    %c0_19 = arith.constant 0 : index
    %25 = vector.load %arg8[%c0_18, %c0_19] : memref<256x128xbf16, #tpu.memory_space<vmem>>, vector<256x128xbf16>
    %cst_20 = arith.constant dense<0.000000e+00> : vector<256x128xf32>
    %26 = tpu.matmul %24, %25, %cst_20 {dimension_numbers = #tpu.dot_dimension_numbers<[1], [0], [0], [1], [0, 0, 1, 1], [], []>} : vector<256x256xbf16>, vector<256x128xbf16>, vector<256x128xf32> -> vector<256x128xf32>
    %c0_21 = arith.constant 0 : index
    %c0_22 = arith.constant 0 : index
    %27 = vector.load %arg9[%c0_21, %c0_22] : memref<1x128xf32, #tpu.memory_space<vmem>>, vector<1x128xf32>
    %28 = vector.broadcast %27 : vector<1x128xf32> to vector<256x128xf32>
    %29 = arith.addf %26, %28 : vector<256x128xf32>
    %30 = arith.truncf %29 : vector<256x128xf32> to vector<256x128xbf16>
    %c0_23 = arith.constant 0 : index
    %c0_24 = arith.constant 0 : index
    %31 = vector.load %arg10[%c0_23, %c0_24] : memref<256x128xbf16, #tpu.memory_space<vmem>>, vector<256x128xbf16>
    tpu.vector_store %arg10[%c0_23, %c0_24], %30 {strides = array<i32>} : memref<256x128xbf16, #tpu.memory_space<vmem>>, vector<256x128xbf16>,
    return
  }
  func.func @transform_0(%arg0: i32) -> (i32, i32) {
    %c0_i32 = arith.constant 0 : i32
    %c0_i32_0 = arith.constant 0 : i32
    return %arg0, %c0_i32 : i32, i32
  }
  func.func @transform_1(%arg0: i32) -> (i32, i32) {
    %c0_i32 = arith.constant 0 : i32
    %c0_i32_0 = arith.constant 0 : i32
    %c0_i32_1 = arith.constant 0 : i32
    return %c0_i32, %c0_i32_0 : i32, i32
  }
  func.func @transform_2(%arg0: i32) -> (i32, i32) {
    %c0_i32 = arith.constant 0 : i32
    %c0_i32_0 = arith.constant 0 : i32
    %c0_i32_1 = arith.constant 0 : i32
    return %c0_i32, %c0_i32_0 : i32, i32
  }
  func.func @transform_3(%arg0: i32) -> (i32, i32) {
    %c0_i32 = arith.constant 0 : i32
    %c0_i32_0 = arith.constant 0 : i32
    %c0_i32_1 = arith.constant 0 : i32
    return %c0_i32, %c0_i32_0 : i32, i32
  }
  func.func @transform_4(%arg0: i32) -> (i32, i32) {
    %c0_i32 = arith.constant 0 : i32
    %c0_i32_0 = arith.constant 0 : i32
    %c0_i32_1 = arith.constant 0 : i32
    return %c0_i32, %c0_i32_0 : i32, i32
  }
  func.func @transform_5(%arg0: i32) -> (i32, i32) {
    %c0_i32 = arith.constant 0 : i32
    %c0_i32_0 = arith.constant 0 : i32
    %c0_i32_1 = arith.constant 0 : i32
    return %c0_i32, %c0_i32_0 : i32, i32
  }
  func.func @transform_6(%arg0: i32) -> (i32, i32) {
    %c0_i32 = arith.constant 0 : i32
    %c0_i32_0 = arith.constant 0 : i32
    %c0_i32_1 = arith.constant 0 : i32
    return %c0_i32, %c0_i32_0 : i32, i32
  }
  func.func @transform_7(%arg0: i32) -> (i32, i32) {
    %c0_i32 = arith.constant 0 : i32
    %c0_i32_0 = arith.constant 0 : i32
    %c0_i32_1 = arith.constant 0 : i32
    return %c0_i32, %c0_i32_0 : i32, i32
  }
  func.func @transform_8(%arg0: i32) -> (i32, i32) {
    %c0_i32 = arith.constant 0 : i32
    %c0_i32_0 = arith.constant 0 : i32
    %c0_i32_1 = arith.constant 0 : i32
    return %c0_i32, %c0_i32_0 : i32, i32
  }
  func.func @transform_9(%arg0: i32) -> (i32, i32) {
    %c0_i32 = arith.constant 0 : i32
    %c0_i32_0 = arith.constant 0 : i32
    return %arg0, %c0_i32 : i32, i32
  }
}

</mosaic_0001>

<bundles_post_ra>
// kernel: tpu_custom_call.1
= control target key start
LH: loop header
LB: loop body
LE: loop exit
PB: predicated region body
PF: predicated region fallthrough
CT: control target
= control target key end

     0   :  { %7 = vsyncpa [#allocation3], 0  ;;  %s633_s0 = inlined_call_operand.hbm [shape: f32[16,128], index: 0, kind: input, shape index: {}]   ;;  %s634_s1 = inlined_call_operand.hbm [shape: f32[8,128], index: 1, kind: input, shape index: {}]   ;;  %s635_s2 = inlined_call_operand.hbm [shape: f32[16,128], index: 2, kind: output, shape index: {}]  }
   0x1   :  { %9 = vsyncpa [#allocation3 + $0x1], 0 }
   0x2   :  { %10 = vsyncpa [#allocation6], 0 }
   0x3   :  { %11 = vsyncpa [#allocation4], 0 }
   0x4   :  { %13 = vsyncpa [#allocation4 + $0x1], 0  ;;  %s495_s9 = smov 0   ;;  %s497_s10 = smov 0  }
   0x5   :  { %s499_s11 = smov 0   ;;  %s501_s12 = smov 0  }
   0x6 LB: > { %s516_s13 = sadd.s32 4294967295, %s477_s12   ;;  %s276_s14 = sadd.s32 4294967294, %s477_s12   ;;  %s477_s12 = sphi %s501_s12, %s645_s12   ;;  %s473_s11 = sphi %s499_s11, %s644_s11   ;;  %s469_s10 = sphi %s497_s10, %s643_s10   ;;  %s465_s9 = sphi %s495_s9, %s642_s9  }
   0x7   : > { %p39_p0 = scmp.ne.s32.totalorder %s469_s10, %s465_s9  ;;  %p40_p1 = scmp.eq.s32.totalorder %s516_s13, 0 }
   0x8   : > { %p84_p2 = scmp.eq.s32.totalorder %s516_s13, 1  ;;  %p90_p3 = scmp.eq.s32.totalorder %s276_s14, 1 }
   0x9   : > { %p525_p4 = por %p40_p1, %p39_p0  ;;  %p277_p5 = scmp.ge.s32.totalorder %s477_s12, 1 }
   0xa   : > { %p530_p6 = por %p90_p3, %p39_p0  ;;  %p97_p7 = scmp.lt.s32.totalorder %s477_s12, 3 }
   0xb   : > { %s109_s19 = sshll.u32 %s634_s1, 4  ;;  %s479_s21 = smov [#allocation5]   ;;  %s110_s19 = int_to_ptr.hbm [resolvable:$true] %s109_s19 }
   0xc   : > { %p538_p8 = pnand %p277_p5, %p97_p7  ;;  %s111_s22 = sshll.u32 %s479_s21, 4  ;;  %s112_s22 = int_to_ptr.vmem [resolvable:$true] %s111_s22 }
   0xd   : > { %s548_s23 = sadd.s32 1, %s477_s12   ;;  %s26_s24 = sadd.s32 1, %s473_s11 }
   0xe   : > { %p298_p10 = pneg %p538_p8  ;;  %s23_s25 = ssub.s32 %s477_s12, %s548_s23 }
   0xf   : > { %p24_p12 = scmp.eq.s32.totalorder %s23_s25, 0  ;;  %p33_p13 = scmp.ne.s32.totalorder %s473_s11, %s469_s10 }
  0x10   : > { %p299_p11 = pnand %p298_p10, %p40_p1  ;;  %p34_p0 = scmp.eq.s32.totalorder %s477_s12, 0 }
  0x11   : > { %s557_s26 = scalar_select %p24_p12, %s473_s11, %s26_s24  }
  0x12   : > { %301 = dma.hbm_to_vmem [thread:$0]  (!%p299_p11), %s110_s19, 128, %s112_s22, [#allocation6]  }
  0x13   : > { %p561_p3 = por %p84_p2, %p33_p13  ;;  %p311_p5 = scmp.lt.s32.totalorder %s477_s12, 2 }
  0x14   : > { %s122_s28 = sand.u32 1, %s473_s11   ;;  %s281_s29 = sshll.u32 %s477_s12, 3 }
  0x15   : > { %p35_p7 = por %p34_p0, %p33_p13  ;;  %s280_s30 = sshll.u32 %s122_s28, 3 }
  0x16   : > { %s130_s5 = scalar_lea.hbm %s633_s0, %s281_s29  ;;  %s126_s7 = scalar_lea.vmem [#allocation2], %s280_s30 }
  0x17   : > { %s132_s6 = sshll.u32 %s130_s5, 4  ;;  %s134_s8 = sshll.u32 %s126_s7, 4  ;;  %s133_s6 = int_to_ptr.hbm [resolvable:$true] %s132_s6  ;;  %s135_s8 = int_to_ptr.vmem [resolvable:$true] %s134_s8 }
  0x18   : > { %p571_p10 = pnand %p311_p5, %p35_p7  ;;  %s123_s17 = scalar_lea.sflag [#allocation3], %s122_s28 }
  0x19   : > { %s377_s18 = sshra.s32 %s133_s6, 4  ;;  %s384_s24 = scalar_lea.hbm %s633_s0, 16  ;;  %s378_s18 = int_to_ptr.hbm [resolvable:$true] %s377_s18 }
  0x1a   : > { %s379_s19 = scalar_lea.hbm %s378_s18, 8  ;;  %p381_p11 = pneg %p571_p10 }
  0x1b   : > { %p380_p2 = scmp.ne.s32.totalorder %s378_s18, %s379_s19  ;;  %p385_p0 = scmp.lt.s32.totalorder %s378_s18, %s633_s0 }
  0x1c   : > { %p386_p5 = scmp.lt.s32.totalorder %s384_s24, %s379_s19 }
  0x1d   : > { %p382_p12 = pnand %p381_p11, %p380_p2 }
  0x1e   : > { %p387_p7 = por %p386_p5, %p385_p0 }
  0x1f   : > { %p383_p13 = pneg %p382_p12 }
  0x21   : > { %p388_p9 = pnand %p387_p7, %p383_p13 }
  0x23   : > { %391 = shalt.err (!%p388_p9)
}
  0x24   : > { %305 = dma.hbm_to_vmem [thread:$0]  (!%p571_p10), %s133_s6, 128, %s135_s8, %s123_s17  }
  0x25   : > { %143 = sbr.rel (%p538_p8) target bundleno = 60 (0x3c), region = 28  ;;  %s588_s28 = sand.u32 (!%p538_p8), 1, %s469_s10  }
  0x26   : > { %s283_s30 = sshll.u32 (!%p538_p8), %s588_s28, 3  ;;  %s146_s3 = scalar_lea.sflag (!%p538_p8), [#allocation3], %s588_s28 }
  0x27   : > { %s149_s4 = scalar_lea.vmem (!%p538_p8), [#allocation2], %s283_s30 }
  0x2a   : > { %452 = dma.done.wait (%p525_p4), %s146_s3, 128  }
  0x2b   : > { %454 = vsyncadd (%p525_p4), %s146_s3, 4294967168 }
  0x2c   : > { %456 = dma.done.wait (%p40_p1), [#allocation6], 128  }
  0x2d   : > { %458 = vsyncadd (%p40_p1), [#allocation6], 4294967168  ;;  %s287_s20 = sshll.u32 %s516_s13, 3  ;;  %s175_s8 = scalar_lea.vmem [#allocation7], %s283_s30  ;;  %v176_v0 = vld [vmem:[%s149_s4] sm:$0xff]  ;;  %v177_v1 = vld [vmem:[#allocation5] sm:$0xff] }
  0x2e   : > { %s191_s7 = scalar_lea.hbm %s635_s2, %s287_s20  ;;  %s193_s14 = sshll.u32 %s175_s8, 4  ;;  %v178_v2 = vadd.f32 %v177_v1, %v176_v0  ;;  %s194_s14 = int_to_ptr.vmem [resolvable:$true] %s193_s14 }
  0x2f   : > { %s195_s17 = sshll.u32 %s191_s7, 4  ;;  %s181_s15 = scalar_lea.sflag [#allocation4], %s588_s28  ;;  %s196_s17 = int_to_ptr.hbm [resolvable:$true] %s195_s17 }
  0x30   : > { %179 = vst [vmem:[%s175_s8] sm:$0xff] %v178_v2  ;;  %s421_s18 = sshra.s32 %s196_s17, 4  ;;  %s427_s22 = scalar_lea.hbm %s635_s2, 16  ;;  %s422_s18 = int_to_ptr.hbm [resolvable:$true] %s421_s18 }
  0x31   : > { %s423_s19 = scalar_lea.hbm %s422_s18, 8  ;;  %p428_p9 = scmp.lt.s32.totalorder %s422_s18, %s635_s2 }
  0x32   : > { %p424_p1 = scmp.ne.s32.totalorder %s422_s18, %s423_s19  ;;  %p429_p10 = scmp.lt.s32.totalorder %s427_s22, %s423_s19 }
  0x34   : > { %p425_p4 = pnand %p424_p1, %p561_p3  ;;  %p430_p2 = por %p429_p10, %p428_p9 }
  0x36   : > { %p426_p8 = pneg %p425_p4 }
  0x38   : > { %p431_p11 = pnand %p430_p2, %p426_p8 }
  0x3a   : > { %434 = shalt.err (!%p431_p11)
}
  0x3b   : > { %296 = dma.vmem_to_hbm [thread:$0]  (%p561_p3), %s194_s14, 128, %s196_s17, %s181_s15  }
  0x3c PF: > { %s207_s29 = sand.u32 1, %s465_s9   ;;  %p641_p12 = scmp.ge.s32.totalorder %s477_s12, 2 }
  0x3d   : > { %s208_s28 = scalar_lea.sflag [#allocation4], %s207_s29 }
  0x3e   : > { %p307_p13 = pnand %p641_p12, %p530_p6 }
  0x40   : > { %p308_p0 = pneg %p307_p13 }
  0x42   : > { %460 = dma.done.wait (%p308_p0), %s208_s28, 128  }
  0x43   : > { %462 = vsyncadd (%p308_p0), %s208_s28, 4294967168  ;;  %p16_p5 = scmp.ge.s32.totalorder %s548_s23, 4   ;;  %s642_s9 = smov %s469_s10 }
  0x44   : > { %s643_s10 = smov %s473_s11  ;;  %s644_s11 = smov %s557_s26 }
  0x45   : > { %s645_s12 = smov %s548_s23  ;;  %18 = sbr.rel (!%p16_p5) target bundleno = 6 (0x6), region = 77 }
  0x4a   :  { %214 = vsyncpa [#allocation3], 1 }
  0x4b   :  { %216 = vsyncpa [#allocation3 + $0x1], 1 }
  0x4c   :  { %217 = vsyncpa [#allocation6], 1 }
  0x4d   :  { %218 = vsyncpa [#allocation4], 1 }
  0x4e   :  { %220 = vsyncpa [#allocation4 + $0x1], 1 }

// kernel: tpu_custom_call.1
= control target key start
LH: loop header
LB: loop body
LE: loop exit
PB: predicated region body
PF: predicated region fallthrough
CT: control target
= control target key end

     0   :  { %14 = vsyncpa [#allocation3], 0  ;;  %s2985_s0 = inlined_call_operand.vmem [shape: bf16[512,16], index: 0, kind: input, shape index: {}]   ;;  %s2986_s1 = inlined_call_operand.hbm [shape: bf16[16,64], index: 1, kind: input, shape index: {}]   ;;  %s2987_s2 = inlined_call_operand.hbm [shape: f32[1,64], index: 2, kind: input, shape index: {}]   ;;  %s2988_s3 = inlined_call_operand.vmem [shape: bf16[64,128], index: 3, kind: input, shape index: {}]   ;;  %s2989_s4 = inlined_call_operand.vmem [shape: f32[1,128], index: 4, kind: input, shape index: {}]   ;;  %s2990_s5 = inlined_call_operand.vmem [shape: bf16[128,256], index: 5, kind: input, shape index: {}]   ;;  %s2991_s6 = inlined_call_operand.vmem [shape: f32[1,256], index: 6, kind: input, shape index: {}]   ;;  %s2992_s7 = inlined_call_operand.vmem [shape: bf16[256,128], index: 7, kind: input, shape index: {}]   ;;  %s2993_s8 = inlined_call_operand.vmem [shape: f32[1,128], index: 8, kind: input, shape index: {}]   ;;  %s2994_s9 = inlined_call_operand.hbm [shape: bf16[512,128], index: 9, kind: output, shape index: {}]  }
   0x1   :  { %15 = vsyncpa [#allocation6], 0 }
   0x2   :  { %16 = vsyncpa [#allocation4], 0 }
   0x3   :  { %18 = vsyncpa [#allocation4 + $0x1], 0  ;;  %s2426_s30 = smov 0   ;;  %s2428_s10 = smov 0  }
   0x4   :  { %s2430_s11 = smov 0   ;;  %s2432_s12 = smov 0  }
   0x5 LB: > { %s2447_s13 = sadd.s32 4294967295, %s2368_s12   ;;  %s1749_s14 = sadd.s32 4294967294, %s2368_s12   ;;  %s2368_s12 = sphi %s2432_s12, %s3001_s12   ;;  %s2364_s11 = sphi %s2430_s11, %s3000_s11   ;;  %s2360_s10 = sphi %s2428_s10, %s2999_s10   ;;  %s2356_s30 = sphi %s2426_s30, %s2998_s30  }
   0x6   : > { %s2451_s15 = sadd.s32 1, %s2368_s12   ;;  %s225_s16 = sadd.s32 1, %s2364_s11 }
   0x7   : > { %s222_s17 = ssub.s32 %s2368_s12, %s2451_s15  ;;  %p235_p0 = scmp.ne.s32.totalorder %s2364_s11, %s2360_s10 }
   0x8   : > { %p223_p1 = scmp.eq.s32.totalorder %s222_s17, 0  ;;  %p236_p2 = scmp.eq.s32.totalorder %s2447_s13, 1 }
   0x9   : > { %p241_p3 = scmp.ne.s32.totalorder %s2360_s10, %s2356_s30  ;;  %p242_p4 = scmp.eq.s32.totalorder %s1749_s14, 1 }
   0xa   : > { %s2462_s18 = scalar_select %p223_p1, %s2364_s11, %s225_s16  }
   0xb   : > { %p2464_p5 = por %p236_p2, %p235_p0  ;;  %p2468_p6 = por %p242_p4, %p241_p3 }
   0xc   : > { %p1750_p7 = scmp.ge.s32.totalorder %s2368_s12, 1  ;;  %p249_p8 = scmp.lt.s32.totalorder %s2368_s12, 3 }
   0xd   : > { %p2192_p9 = scmp.eq.s32.totalorder %s2447_s13, 0  ;;  %s260_s24 = sshll.u32 %s2986_s1, 4  ;;  %s261_s24 = int_to_ptr.hbm [resolvable:$true] %s260_s24 }
   0xe   : > { %p2475_p10 = pnand %p1750_p7, %p249_p8  ;;  %s2370_s25 = smov [#allocation2]  }
   0xf   : > { %s262_s26 = sshll.u32 %s2370_s25, 4  ;;  %s275_s29 = sshll.u32 %s2987_s2, 4  ;;  %s263_s26 = int_to_ptr.vmem [resolvable:$true] %s262_s26  ;;  %s276_s29 = int_to_ptr.hbm [resolvable:$true] %s275_s29 }
  0x10   : > { %p2181_p11 = pneg %p2475_p10  ;;  %s2371_s14 = smov 64  }
  0x11   : > { %s2372_s16 = smov 4   ;;  %s2373_s17 = smov [#allocation5]  }
  0x12   : > { %p2182_p12 = pnand %p2192_p9, %p2181_p11  ;;  %s277_s22 = sshll.u32 %s2373_s17, 4  ;;  %s278_s22 = int_to_ptr.vmem [resolvable:$true] %s277_s22 }
  0x13   : > { %317 = sbr.rel (%p2475_p10) target bundleno = 848 (0x350), region = 56 }
  0x14   : > { %2184 = dma.hbm_to_vmem [thread:$0]  (!%p2182_p12), %s261_s24, 128, %s263_s26, [#allocation3], %s2371_s14, %s2371_s14, %s2372_s16  }
  0x15   : > { %2187 = dma.hbm_to_vmem [thread:$0]  (!%p2182_p12), %s276_s29, 16, %s278_s22, [#allocation6]  }
  0x18   : > { %2343 = dma.done.wait (%p2192_p9), [#allocation3], 128  }
  0x19   : > { %2345 = vsyncadd (%p2192_p9), [#allocation3], 4294967168 }
  0x1a   : > { %2347 = dma.done.wait (%p2192_p9), [#allocation6], 16  }
  0x1b   : > { %2349 = vsyncadd (%p2192_p9), [#allocation6], 4294967280  ;;  %s1758_s23 = sshll.u32 %s2447_s13, 5  ;;  %v2025_v0 = vld [vmem:[#allocation2] sm:$0xff]  ;;  %vm491_vm0 = vcmask 130048   ;;  %v2029_v13 = vld [vmem:[%s2988_s3 + $0x18] sm:$0xff] }
  0x1c   : > { %p360_p13 = scmp.lt.s32.totalorder %s1758_s23, 63  ;;  %547 = vmatpush.bf16.msra.mxu0 %v2025_v0  ;;  %2158 = vmatpush.bf16.msra.mxu3 %v2025_v0  ;;  %v2028_v16 = vld [vmem:[%s2988_s3 + $0x10] sm:$0xff]  ;;  %v2027_v17 = vld [vmem:[%s2988_s3 + $0x8] sm:$0xff]  ;;  %v2026_v18 = vld [vmem:[%s2988_s3] sm:$0xff]  ;;  %vm713_vm1 = vcmask 523264   ;;  %s356_s29 = sand.u32 1, %s2360_s10  }
  0x1d   : > { %766 = vmatpush.bf16.msra.mxu1 %v2029_v13  ;;  %2159 = vmatpush.bf16.msra.mxu2 %v2029_v13  ;;  %v2548_v22 = vld [vmem:[#allocation5] ss:$0 sm:$0xff]  ;;  %v2044_v30 = vld [vmem:[%s2990_s5 + $0x74] sm:$0xf]  ;;  %v1936_v31 = vld [vmem:[%s2990_s5 + $0x78] sm:$0xf0] }
  0x1e   : > { %s3003_s23 = smov (!%p360_p13, %s1758_s23), 63  ;;  %v1939_v32 = vor.u32 %v2044_v30, %v1936_v31  ;;  %v1934_v37 = vld [vmem:[%s2990_s5 + $0x70] sm:$0xf]  ;;  %v2045_v38 = vld [vmem:[%s2990_s5 + $0x74] sm:$0xf0]  ;;  %s1757_s14 = sshll.u32 %s356_s29, 7 }
  0x1f   : > { %s1759_s24 = sshll.u32 %s3003_s23, 2  ;;  %v1935_v40 = vor.u32 %v2045_v38, %v1934_v37  ;;  %v2042_v50 = vld [vmem:[%s2990_s5 + $0x64] sm:$0xf]  ;;  %v1928_v51 = vld [vmem:[%s2990_s5 + $0x68] sm:$0xf0]  ;;  %s2879_s16 = scalar_lea.vmem [#allocation7], %s1757_s14 }
  0x20   : > { %s2503_s26 = scalar_lea.vmem %s2985_s0, %s1759_s24  ;;  %1090 = vmatpush.bf16.msrb.mxu3 %v1939_v32  ;;  %v1931_v52 = vor.u32 %v2042_v50, %v1928_v51  ;;  %v1926_v53 = vld [vmem:[%s2990_s5 + $0x60] sm:$0xf]  ;;  %v2043_v54 = vld [vmem:[%s2990_s5 + $0x64] sm:$0xf0]  ;;  %v2040_v63 = vld [vmem:[%s2990_s5 + $0x54] sm:$0xf] }
  0x21   : > { %v2009_v1 = vld [vmem:[%s2503_s26] sm:$0xff]  ;;  %v2018_v2 = vld [vmem:[%s2503_s26 + $0x48] sm:$0xff]  ;;  %v2019_v4 = vld [vmem:[%s2503_s26 + $0x50] sm:$0xff]  ;;  %767 = vmatpush.bf16.msra.mxu1 %v2028_v16  ;;  %2160 = vmatpush.bf16.msra.mxu2 %v2028_v16  ;;  %v1927_v56 = vor.u32 %v2043_v54, %v1926_v53  ;;  %s2062_s17 = sshll.u32 %s2447_s13, 7  ;;  %s1662_s25 = sshll.u32 %s2879_s16, 4  ;;  %s1663_s25 = int_to_ptr.vmem [resolvable:$true] %s1662_s25 }
  0x22   : > { %1828 = vmatmul.msk.bf16.vlgmr.msra.gmra.mxu0 %vm491_vm0, %v2009_v1  ;;  %1837 = vmatmul.msk.bf16.vlgmr.msra.gmra.mxu3 %vm491_vm0, %v2018_v2  ;;  %v2010_v3 = vld [vmem:[%s2503_s26 + $0x8] sm:$0xff]  ;;  %v2011_v5 = vld [vmem:[%s2503_s26 + $0x10] sm:$0xff]  ;;  %v2020_v6 = vld [vmem:[%s2503_s26 + $0x58] sm:$0xff]  ;;  %s1661_s24 = scalar_lea.hbm %s2994_s9, %s2062_s17  ;;  %s1650_s13 = scalar_lea.sflag [#allocation4], %s356_s29 }
  0x23   : > { %v2012_v7 = vld [vmem:[%s2503_s26 + $0x18] sm:$0xff]  ;;  %v2021_v8 = vld [vmem:[%s2503_s26 + $0x60] sm:$0xff]  ;;  %v2022_v10 = vld [vmem:[%s2503_s26 + $0x68] sm:$0xff]  ;;  %s1664_s21 = sshll.u32 %s1661_s24, 4  ;;  %s2318_s17 = scalar_lea.hbm %s2994_s9, 256  ;;  %s1665_s21 = int_to_ptr.hbm [resolvable:$true] %s1664_s21 }
  0x24   : > { %v2013_v9 = vld [vmem:[%s2503_s26 + $0x20] sm:$0xff]  ;;  %v2014_v11 = vld [vmem:[%s2503_s26 + $0x28] sm:$0xff]  ;;  %v2023_v12 = vld [vmem:[%s2503_s26 + $0x70] sm:$0xff]  ;;  %1091 = vmatpush.bf16.msrb.mxu3 %v1931_v52 }
  0x25   : > { %v2015_v14 = vld [vmem:[%s2503_s26 + $0x30] sm:$0xff]  ;;  %v2024_v15 = vld [vmem:[%s2503_s26 + $0x78] sm:$0xff]  ;;  %768 = vmatpush.bf16.msra.mxu1 %v2027_v17  ;;  %2161 = vmatpush.bf16.msra.mxu2 %v2027_v17  ;;  %v2017_v20 = vld [vmem:[%s2503_s26 + $0x40] sm:$0xff] }
  0x26   : > { %v2016_v19 = vld [vmem:[%s2503_s26 + $0x38] sm:$0xff]  ;;  %v1910_v30 = vld [vmem:[%s2990_s5 + $0x40] sm:$0xf]  ;;  %v2039_v31 = vld [vmem:[%s2990_s5 + $0x44] sm:$0xf0]  ;;  %s2312_s26 = sshra.s32 %s1665_s21, 4  ;;  %s2313_s26 = int_to_ptr.hbm [resolvable:$true] %s2312_s26 }
  0x27   : > { %v1920_v0 = vld [vmem:[%s2990_s5 + $0x58] sm:$0xf0]  ;;  %v1911_v32 = vor.u32 %v2039_v31, %v1910_v30  ;;  %s2314_s27 = scalar_lea.hbm %s2313_s26, 128  ;;  %p2319_p3 = scmp.lt.s32.totalorder %s2313_s26, %s2994_s9 }
  0x28   : > { %v1923_v1 = vor.u32 %v2040_v63, %v1920_v0  ;;  %v1894_v63 = vld [vmem:[%s2990_s5 + $0x20] sm:$0xf]  ;;  %v2035_v0 = vld [vmem:[%s2990_s5 + $0x24] sm:$0xf0]  ;;  %p2315_p0 = scmp.ne.s32.totalorder %s2313_s26, %s2314_s27  ;;  %p2320_p4 = scmp.lt.s32.totalorder %s2318_s17, %s2314_s27 }
  0x29   : > { %769 = vmatpush.bf16.msra.mxu1 %v2026_v18  ;;  %2162 = vmatpush.bf16.msra.mxu2 %v2026_v18 }
  0x2a   : > { %1092 = vmatpush.bf16.msrb.mxu3 %v1923_v1  ;;  %v1895_v1 = vor.u32 %v2035_v0, %v1894_v63  ;;  %p2316_p1 = pnand %p2315_p0, %p2464_p5  ;;  %p2321_p7 = por %p2320_p4, %p2319_p3 }
  0x2c   : > { %p2317_p2 = pneg %p2316_p1 }
  0x2d   : > { %1001 = vmatpush.bf16.msrb.mxu2 %v1935_v40  ;;  %v2036_v40 = vld [vmem:[%s2990_s5 + $0x34] sm:$0xf] }
  0x2e   : > { %p2322_p8 = pnand %p2321_p7, %p2317_p2 }
  0x31   : > { %1002 = vmatpush.bf16.msrb.mxu2 %v1927_v56 }
  0x32   : > { %1829 = vmatmul.msk.bf16.gmra.mxu0 %vm491_vm0, %v2010_v3  ;;  %1838 = vmatmul.msk.bf16.gmra.mxu3 %vm491_vm0, %v2019_v4 }
  0x42   : > { %1830 = vmatmul.msk.bf16.gmra.mxu0 %vm491_vm0, %v2011_v5  ;;  %1839 = vmatmul.msk.bf16.gmra.mxu3 %vm491_vm0, %v2020_v6 }
  0x52   : > { %1831 = vmatmul.msk.bf16.gmra.mxu0 %vm491_vm0, %v2012_v7  ;;  %1840 = vmatmul.msk.bf16.gmra.mxu3 %vm491_vm0, %v2021_v8 }
  0x62   : > { %1832 = vmatmul.msk.bf16.gmra.mxu0 %vm491_vm0, %v2013_v9  ;;  %1841 = vmatmul.msk.bf16.gmra.mxu3 %vm491_vm0, %v2022_v10  ;;  %v1918_v9 = vld [vmem:[%s2990_s5 + $0x50] sm:$0xf]  ;;  %v2041_v10 = vld [vmem:[%s2990_s5 + $0x54] sm:$0xf0] }
  0x72   : > { %1833 = vmatmul.msk.bf16.gmra.mxu0 %vm491_vm0, %v2014_v11  ;;  %1842 = vmatmul.msk.bf16.gmra.mxu3 %vm491_vm0, %v2023_v12  ;;  %v1919_v11 = vor.u32 %v2041_v10, %v1918_v9 }
  0x74   : > { %1003 = vmatpush.bf16.msrb.mxu2 %v1919_v11 }
  0x78   : > { %1004 = vmatpush.bf16.msrb.mxu2 %v1911_v32 }
  0x82   : > { %1834 = vmatmul.msk.bf16.gmra.mxu0 %vm491_vm0, %v2015_v14  ;;  %1843 = vmatmul.msk.bf16.gmra.mxu3 %vm491_vm0, %v2024_v15 }
  0x92   : > { %1835 = vmatmul.msk.bf16.gmra.mxu0 %vm491_vm0, %v2016_v19  ;;  %v2038_v19 = vld [vmem:[%s2990_s5 + $0x44] sm:$0xf] }
  0x9f   : > { %v549_v21 = vpop.f32.mrf.mxu0 }
  0xa0   : > { %v550_v24 = vadd.f32 %v2548_v22, %v549_v21 }
  0xa2   : > { %1836 = vmatmul.msk.bf16.gmra.mxu0 %vm491_vm0, %v2017_v20  ;;  %v629_v27 = vmax.f32 %v550_v24, 0.0  ;;  %v1912_v20 = vld [vmem:[%s2990_s5 + $0x48] sm:$0xf0] }
  0xa3   : > { %v1915_v21 = vor.u32 %v2038_v19, %v1912_v20  ;;  %v1886_v19 = vld [vmem:[%s2990_s5 + $0x10] sm:$0xf]  ;;  %v2033_v20 = vld [vmem:[%s2990_s5 + $0x14] sm:$0xf0] }
  0xa5   : > { %v594_v23 = vpop.f32.mrf.mxu3  ;;  %1093 = vmatpush.bf16.msrb.mxu3 %v1915_v21  ;;  %v1887_v21 = vor.u32 %v2033_v20, %v1886_v19 }
  0xa6   : > { %v595_v29 = vadd.f32 %v2548_v22, %v594_v23 }
  0xa7   : > { %v551_v25 = vpop.f32.mrf.mxu0 }
  0xa8   : > { %v552_v26 = vadd.f32 %v2548_v22, %v551_v25  ;;  %v647_v35 = vmax.f32 %v595_v29, 0.0 }
  0xaa   : > { %v630_v28 = vmax.f32 %v552_v26, 0.0 }
  0xac   : > { %v661_v33 = vpack.c.bf16 %v630_v28, %v629_v27 }
  0xad   : > { %v596_v34 = vpop.f32.mrf.mxu3 }
  0xae   : > { %1860 = vmatmul.msk.bf16.vlgmr.msra.gmra.mxu1 %vm713_vm1, %v661_v33  ;;  %v597_v36 = vadd.f32 %v2548_v22, %v596_v34 }
  0xaf   : > { %v554_v39 = vpop.f32.mrf.mxu0 }
  0xb0   : > { %v648_v41 = vmax.f32 %v597_v36, 0.0  ;;  %v555_v44 = vadd.f32 %v2548_v22, %v554_v39 }
  0xb2   : > { %v670_v42 = vpack.c.bf16 %v648_v41, %v647_v35  ;;  %v631_v47 = vmax.f32 %v555_v44, 0.0  ;;  %v1904_v41 = vld [vmem:[%s2990_s5 + $0x38] sm:$0xf0]  ;;  %v2037_v44 = vld [vmem:[%s2990_s5 + $0x34] sm:$0xf0] }
  0xb4   : > { %1869 = vmatmul.msk.bf16.vlgmr.msra.gmra.mxu2 %vm713_vm1, %v670_v42  ;;  %v1907_v42 = vor.u32 %v2036_v40, %v1904_v41 }
  0xb5   : > { %v599_v43 = vpop.f32.mrf.mxu3 }
  0xb6   : > { %v600_v49 = vadd.f32 %v2548_v22, %v599_v43  ;;  %v1902_v43 = vld [vmem:[%s2990_s5 + $0x30] sm:$0xf]  ;;  %1094 = vmatpush.bf16.msrb.mxu3 %v1907_v42 }
  0xb7   : > { %v556_v45 = vpop.f32.mrf.mxu0 }
  0xb8   : > { %v557_v46 = vadd.f32 %v2548_v22, %v556_v45  ;;  %v649_v58 = vmax.f32 %v600_v49, 0.0  ;;  %v1903_v45 = vor.u32 %v2037_v44, %v1902_v43 }
  0xba   : > { %v632_v48 = vmax.f32 %v557_v46, 0.0  ;;  %1005 = vmatpush.bf16.msrb.mxu2 %v1903_v45 }
  0xbc   : > { %v662_v55 = vpack.c.bf16 %v632_v48, %v631_v47 }
  0xbd   : > { %v601_v57 = vpop.f32.mrf.mxu3 }
  0xbe   : > { %1861 = vmatmul.msk.bf16.gmra.mxu1 %vm713_vm1, %v662_v55  ;;  %v602_v59 = vadd.f32 %v2548_v22, %v601_v57  ;;  %1006 = vmatpush.bf16.msrb.mxu2 %v1895_v1 }
  0xbf   : > { %v559_v60 = vpop.f32.mrf.mxu0 }
  0xc0   : > { %v650_v61 = vmax.f32 %v602_v59, 0.0  ;;  %v560_v3 = vadd.f32 %v2548_v22, %v559_v60  ;;  %v2034_v60 = vld [vmem:[%s2990_s5 + $0x24] sm:$0xf] }
  0xc2   : > { %v671_v62 = vpack.c.bf16 %v650_v61, %v649_v58  ;;  %v633_v6 = vmax.f32 %v560_v3, 0.0  ;;  %v1896_v61 = vld [vmem:[%s2990_s5 + $0x28] sm:$0xf0]  ;;  %1007 = vmatpush.bf16.msrb.mxu2 %v1887_v21  ;;  %v2050_v21 = vld [vmem:[%s2992_s7 + $0x20] sm:$0xff] }
  0xc4   : > { %1870 = vmatmul.msk.bf16.gmra.mxu2 %vm713_vm1, %v671_v62  ;;  %v1899_v62 = vor.u32 %v2034_v60, %v1896_v61  ;;  %v2061_v60 = vld [vmem:[%s2992_s7 + $0x78] sm:$0xff] }
  0xc5   : > { %v604_v2 = vpop.f32.mrf.mxu3  ;;  %1496 = vmatpush.bf16.msrb.mxu1 %v2061_v60 }
  0xc6   : > { %v605_v8 = vadd.f32 %v2548_v22, %v604_v2  ;;  %1095 = vmatpush.bf16.msrb.mxu3 %v1899_v62 }
  0xc7   : > { %v561_v4 = vpop.f32.mrf.mxu0 }
  0xc8   : > { %v562_v5 = vadd.f32 %v2548_v22, %v561_v4  ;;  %v651_v14 = vmax.f32 %v605_v8, 0.0 }
  0xca   : > { %v634_v7 = vmax.f32 %v562_v5, 0.0 }
  0xcc   : > { %v663_v12 = vpack.c.bf16 %v634_v7, %v633_v6 }
  0xcd   : > { %v606_v13 = vpop.f32.mrf.mxu3 }
  0xce   : > { %1862 = vmatmul.msk.bf16.gmra.mxu1 %vm713_vm1, %v663_v12  ;;  %v607_v15 = vadd.f32 %v2548_v22, %v606_v13  ;;  %v2032_v13 = vld [vmem:[%s2990_s5 + $0x14] sm:$0xf] }
  0xcf   : > { %v564_v16 = vpop.f32.mrf.mxu0 }
  0xd0   : > { %v652_v17 = vmax.f32 %v607_v15, 0.0  ;;  %v565_v24 = vadd.f32 %v2548_v22, %v564_v16 }
  0xd2   : > { %v672_v18 = vpack.c.bf16 %v652_v17, %v651_v14  ;;  %v635_v27 = vmax.f32 %v565_v24, 0.0  ;;  %v1888_v14 = vld [vmem:[%s2990_s5 + $0x18] sm:$0xf0] }
  0xd3   : > { %v1891_v16 = vor.u32 %v2032_v13, %v1888_v14 }
  0xd4   : > { %1871 = vmatmul.msk.bf16.gmra.mxu2 %vm713_vm1, %v672_v18 }
  0xd5   : > { %v609_v23 = vpop.f32.mrf.mxu3  ;;  %1096 = vmatpush.bf16.msrb.mxu3 %v1891_v16 }
  0xd6   : > { %v610_v29 = vadd.f32 %v2548_v22, %v609_v23 }
  0xd7   : > { %v566_v25 = vpop.f32.mrf.mxu0 }
  0xd8   : > { %v567_v26 = vadd.f32 %v2548_v22, %v566_v25  ;;  %v653_v35 = vmax.f32 %v610_v29, 0.0 }
  0xda   : > { %v636_v28 = vmax.f32 %v567_v26, 0.0 }
  0xdc   : > { %v664_v33 = vpack.c.bf16 %v636_v28, %v635_v27 }
  0xdd   : > { %v611_v34 = vpop.f32.mrf.mxu3 }
  0xde   : > { %1863 = vmatmul.msk.bf16.gmra.mxu1 %vm713_vm1, %v664_v33  ;;  %v612_v36 = vadd.f32 %v2548_v22, %v611_v34  ;;  %v2030_v34 = vld [vmem:[%s2990_s5 + $0x4] sm:$0xf] }
  0xdf   : > { %v569_v37 = vpop.f32.mrf.mxu0 }
  0xe0   : > { %v654_v38 = vmax.f32 %v612_v36, 0.0  ;;  %v570_v47 = vadd.f32 %v2548_v22, %v569_v37  ;;  %v1878_v36 = vld [vmem:[%s2990_s5] sm:$0xf] }
  0xe2   : > { %v673_v39 = vpack.c.bf16 %v654_v38, %v653_v35  ;;  %v637_v50 = vmax.f32 %v570_v47, 0.0  ;;  %v1880_v35 = vld [vmem:[%s2990_s5 + $0x8] sm:$0xf0] }
  0xe3   : > { %v1883_v38 = vor.u32 %v2030_v34, %v1880_v35  ;;  %v2058_v34 = vld [vmem:[%s2992_s7 + $0x60] sm:$0xff] }
  0xe4   : > { %1872 = vmatmul.msk.bf16.gmra.mxu2 %vm713_vm1, %v673_v39  ;;  %v2031_v39 = vld [vmem:[%s2990_s5 + $0x4] sm:$0xf0] }
  0xe5   : > { %v614_v46 = vpop.f32.mrf.mxu3  ;;  %v1879_v41 = vor.u32 %v2031_v39, %v1878_v36  ;;  %1097 = vmatpush.bf16.msrb.mxu3 %v1883_v38 }
  0xe6   : > { %v615_v52 = vadd.f32 %v2548_v22, %v614_v46 }
  0xe7   : > { %v571_v48 = vpop.f32.mrf.mxu0  ;;  %1008 = vmatpush.bf16.msrb.mxu2 %v1879_v41 }
  0xe8   : > { %v572_v49 = vadd.f32 %v2548_v22, %v571_v48  ;;  %v655_v55 = vmax.f32 %v615_v52, 0.0 }
  0xe9   : > { %2163 = vmatpush.bf16.msra.mxu3 %v2061_v60 }
  0xea   : > { %v638_v51 = vmax.f32 %v572_v49, 0.0  ;;  %v2053_v49 = vld [vmem:[%s2992_s7 + $0x38] sm:$0xff] }
  0xeb   : > { %1407 = vmatpush.bf16.msrb.mxu0 %v2053_v49 }
  0xec   : > { %v665_v53 = vpack.c.bf16 %v638_v51, %v637_v50 }
  0xed   : > { %v616_v54 = vpop.f32.mrf.mxu3 }
  0xee   : > { %1864 = vmatmul.msk.bf16.gmra.mxu1 %vm713_vm1, %v665_v53  ;;  %v617_v56 = vadd.f32 %v2548_v22, %v616_v54 }
  0xef   : > { %v574_v57 = vpop.f32.mrf.mxu0 }
  0xf0   : > { %v656_v58 = vmax.f32 %v617_v56, 0.0  ;;  %v575_v3 = vadd.f32 %v2548_v22, %v574_v57 }
  0xf2   : > { %v674_v59 = vpack.c.bf16 %v656_v58, %v655_v55  ;;  %v639_v6 = vmax.f32 %v575_v3, 0.0  ;;  %v2700_v58 = vld [vmem:[%s2989_s4] ss:$0 sm:$0xff] }
  0xf4   : > { %1873 = vmatmul.msk.bf16.gmra.mxu2 %vm713_vm1, %v674_v59  ;;  %v2052_v59 = vld [vmem:[%s2992_s7 + $0x30] sm:$0xff] }
  0xf5   : > { %v619_v2 = vpop.f32.mrf.mxu3  ;;  %1408 = vmatpush.bf16.msrb.mxu0 %v2052_v59  ;;  %v2056_v59 = vld [vmem:[%s2992_s7 + $0x50] sm:$0xff] }
  0xf6   : > { %v620_v8 = vadd.f32 %v2548_v22, %v619_v2 }
  0xf7   : > { %v576_v4 = vpop.f32.mrf.mxu0 }
  0xf8   : > { %v577_v5 = vadd.f32 %v2548_v22, %v576_v4  ;;  %v657_v11 = vmax.f32 %v620_v8, 0.0 }
  0xfa   : > { %v640_v7 = vmax.f32 %v577_v5, 0.0 }
  0xfc   : > { %v666_v9 = vpack.c.bf16 %v640_v7, %v639_v6 }
  0xfd   : > { %v621_v10 = vpop.f32.mrf.mxu3 }
  0xfe   : > { %1865 = vmatmul.msk.bf16.gmra.mxu1 %vm713_vm1, %v666_v9  ;;  %v622_v12 = vadd.f32 %v2548_v22, %v621_v10  ;;  %v2051_v10 = vld [vmem:[%s2992_s7 + $0x28] sm:$0xff] }
  0xff   : > { %v579_v15 = vpop.f32.mrf.mxu0  ;;  %1409 = vmatpush.bf16.msrb.mxu0 %v2051_v10 }
 0x100   : > { %v658_v17 = vmax.f32 %v622_v12, 0.0  ;;  %v580_v24 = vadd.f32 %v2548_v22, %v579_v15 }
 0x102   : > { %v675_v18 = vpack.c.bf16 %v658_v17, %v657_v11  ;;  %v641_v28 = vmax.f32 %v580_v24, 0.0  ;;  %v2060_v11 = vld [vmem:[%s2992_s7 + $0x70] sm:$0xff] }
 0x103   : > { %1497 = vmatpush.bf16.msrb.mxu1 %v2060_v11  ;;  %2164 = vmatpush.bf16.msra.mxu3 %v2060_v11 }
 0x104   : > { %1874 = vmatmul.msk.bf16.gmra.mxu2 %vm713_vm1, %v675_v18  ;;  %1410 = vmatpush.bf16.msrb.mxu0 %v2050_v21 }
 0x105   : > { %v624_v23 = vpop.f32.mrf.mxu3 }
 0x106   : > { %v625_v27 = vadd.f32 %v2548_v22, %v624_v23  ;;  %v2059_v23 = vld [vmem:[%s2992_s7 + $0x68] sm:$0xff] }
 0x107   : > { %v581_v25 = vpop.f32.mrf.mxu0  ;;  %1498 = vmatpush.bf16.msrb.mxu1 %v2059_v23  ;;  %2165 = vmatpush.bf16.msra.mxu3 %v2059_v23 }
 0x108   : > { %v582_v26 = vadd.f32 %v2548_v22, %v581_v25  ;;  %v659_v31 = vmax.f32 %v625_v27, 0.0 }
 0x10a   : > { %v642_v29 = vmax.f32 %v582_v26, 0.0 }
 0x10b   : > { %1499 = vmatpush.bf16.msrb.mxu1 %v2058_v34  ;;  %2166 = vmatpush.bf16.msra.mxu3 %v2058_v34 }
 0x10c   : > { %v667_v30 = vpack.c.bf16 %v642_v29, %v641_v28 }
 0x10d   : > { %v626_v32 = vpop.f32.mrf.mxu3 }
 0x10e   : > { %1866 = vmatmul.msk.bf16.gmra.mxu1 %vm713_vm1, %v667_v30  ;;  %v627_v33 = vadd.f32 %v2548_v22, %v626_v32 }
 0x10f   : > { %v584_v37 = vpop.f32.mrf.mxu0 }
 0x110   : > { %v660_v40 = vmax.f32 %v627_v33, 0.0  ;;  %v585_v43 = vadd.f32 %v2548_v22, %v584_v37  ;;  %v2049_v33 = vld [vmem:[%s2992_s7 + $0x18] sm:$0xff] }
 0x111   : > { %1411 = vmatpush.bf16.msrb.mxu0 %v2049_v33 }
 0x112   : > { %v676_v42 = vpack.c.bf16 %v660_v40, %v659_v31  ;;  %v643_v46 = vmax.f32 %v585_v43, 0.0 }
 0x114   : > { %1875 = vmatmul.msk.bf16.gmra.mxu2 %vm713_vm1, %v676_v42 }
 0x117   : > { %v586_v44 = vpop.f32.mrf.mxu0 }
 0x118   : > { %v587_v45 = vadd.f32 %v2548_v22, %v586_v44 }
 0x11a   : > { %v644_v47 = vmax.f32 %v587_v45, 0.0  ;;  %v2048_v45 = vld [vmem:[%s2992_s7 + $0x10] sm:$0xff] }
 0x11b   : > { %1412 = vmatpush.bf16.msrb.mxu0 %v2048_v45 }
 0x11c   : > { %v668_v48 = vpack.c.bf16 %v644_v47, %v643_v46  ;;  %v2057_v46 = vld [vmem:[%s2992_s7 + $0x58] sm:$0xff] }
 0x11d   : > { %1500 = vmatpush.bf16.msrb.mxu1 %v2057_v46  ;;  %2167 = vmatpush.bf16.msra.mxu3 %v2057_v46 }
 0x11e   : > { %1867 = vmatmul.msk.bf16.gmra.mxu1 %vm713_vm1, %v668_v48 }
 0x11f   : > { %v589_v50 = vpop.f32.mrf.mxu0 }
 0x120   : > { %v590_v51 = vadd.f32 %v2548_v22, %v589_v50 }
 0x121   : > { %1501 = vmatpush.bf16.msrb.mxu1 %v2056_v59  ;;  %2168 = vmatpush.bf16.msra.mxu3 %v2056_v59 }
 0x122   : > { %v645_v54 = vmax.f32 %v590_v51, 0.0 }
 0x127   : > { %v591_v52 = vpop.f32.mrf.mxu0 }
 0x128   : > { %v592_v53 = vadd.f32 %v2548_v22, %v591_v52 }
 0x12a   : > { %v646_v55 = vmax.f32 %v592_v53, 0.0 }
 0x12b   : > { %v771_v56 = vpop.f32.mrf.mxu1 }
 0x12c   : > { %v669_v57 = vpack.c.bf16 %v646_v55, %v645_v54  ;;  %v772_v22 = vadd.f32 %v2700_v58, %v771_v56 }
 0x12e   : > { %1868 = vmatmul.msk.bf16.gmra.mxu1 %vm713_vm1, %v669_v57  ;;  %v851_v63 = vmax.f32 %v772_v22, 0.0  ;;  %v2047_v57 = vld [vmem:[%s2992_s7 + $0x8] sm:$0xff] }
 0x12f   : > { %1413 = vmatpush.bf16.msrb.mxu0 %v2047_v57 }
 0x133   : > { %v773_v61 = vpop.f32.mrf.mxu1 }
 0x134   : > { %v774_v62 = vadd.f32 %v2700_v58, %v773_v61 }
 0x136   : > { %v852_v0 = vmax.f32 %v774_v62, 0.0 }
 0x137   : > { %v2711_v1 = vpop.f32.mrf.mxu2 }
 0x138   : > { %v883_v2 = vpack.c.bf16 %v852_v0, %v851_v63 }
 0x13a   : > { %1009 = vmatmul.bf16.vlgmr.msrb.gmra.mxu2 %v883_v2  ;;  %1098 = vmatmul.bf16.vlgmr.msrb.gmra.mxu3 %v883_v2 }
 0x13b   : > { %v776_v3 = vpop.f32.mrf.mxu1 }
 0x13c   : > { %v777_v5 = vadd.f32 %v2700_v58, %v776_v3 }
 0x13e   : > { %v853_v8 = vmax.f32 %v777_v5, 0.0  ;;  %v2046_v5 = vld [vmem:[%s2992_s7] sm:$0xff] }
 0x13f   : > { %v2713_v4 = vpop.f32.mrf.mxu2  ;;  %1414 = vmatpush.bf16.msrb.mxu0 %v2046_v5 }
 0x140   : > { %v819_v33 = vadd.f32 %v2700_v58, %v2713_v4 }
 0x143   : > { %v778_v6 = vpop.f32.mrf.mxu1 }
 0x144   : > { %v779_v7 = vadd.f32 %v2700_v58, %v778_v6  ;;  %v2055_v6 = vld [vmem:[%s2992_s7 + $0x48] sm:$0xff] }
 0x145   : > { %1502 = vmatpush.bf16.msrb.mxu1 %v2055_v6  ;;  %2169 = vmatpush.bf16.msra.mxu3 %v2055_v6 }
 0x146   : > { %v854_v9 = vmax.f32 %v779_v7, 0.0 }
 0x147   : > { %v2723_v12 = vpop.f32.mrf.mxu2 }
 0x148   : > { %v884_v13 = vpack.c.bf16 %v854_v9, %v853_v8 }
 0x14a   : > { %1014 = vmatmul.bf16.gmra.mxu2 %v884_v13  ;;  %1103 = vmatmul.bf16.gmra.mxu3 %v884_v13 }
 0x14b   : > { %v781_v14 = vpop.f32.mrf.mxu1 }
 0x14c   : > { %v782_v16 = vadd.f32 %v2700_v58, %v781_v14  ;;  %v2054_v14 = vld [vmem:[%s2992_s7 + $0x40] sm:$0xff] }
 0x14d   : > { %1503 = vmatpush.bf16.msrb.mxu1 %v2054_v14  ;;  %2170 = vmatpush.bf16.msra.mxu3 %v2054_v14 }
 0x14e   : > { %v855_v19 = vmax.f32 %v782_v16, 0.0 }
 0x14f   : > { %v2725_v15 = vpop.f32.mrf.mxu2 }
 0x153   : > { %v783_v17 = vpop.f32.mrf.mxu1 }
 0x154   : > { %v784_v18 = vadd.f32 %v2700_v58, %v783_v17 }
 0x156   : > { %v856_v20 = vmax.f32 %v784_v18, 0.0 }
 0x157   : > { %v2735_v26 = vpop.f32.mrf.mxu2 }
 0x158   : > { %v885_v24 = vpack.c.bf16 %v856_v20, %v855_v19 }
 0x15a   : > { %1019 = vmatmul.bf16.gmra.mxu2 %v885_v24  ;;  %1108 = vmatmul.bf16.gmra.mxu3 %v885_v24 }
 0x15b   : > { %v786_v25 = vpop.f32.mrf.mxu1 }
 0x15c   : > { %v787_v27 = vadd.f32 %v2700_v58, %v786_v25 }
 0x15e   : > { %v857_v31 = vmax.f32 %v787_v27, 0.0 }
 0x15f   : > { %v2739_v30 = vpop.f32.mrf.mxu2 }
 0x160   : > { %v829_v14 = vadd.f32 %v2700_v58, %v2739_v30 }
 0x163   : > { %v788_v28 = vpop.f32.mrf.mxu1 }
 0x164   : > { %v789_v29 = vadd.f32 %v2700_v58, %v788_v28  ;;  %v915_v28 = vld [vmem:[%s2991_s6] sm:$0x3] }
 0x165   : > { %v2801_v34 = vperm.slane %v915_v28, 0 }
 0x166   : > { %v858_v32 = vmax.f32 %v789_v29, 0.0 }
 0x167   : > { %v2747_v37 = vpop.f32.mrf.mxu2 }
 0x168   : > { %v886_v35 = vpack.c.bf16 %v858_v32, %v857_v31  ;;  %v817_v32 = vadd.f32 %v2700_v58, %v2711_v1 }
 0x16a   : > { %1024 = vmatmul.bf16.gmra.mxu2 %v886_v35  ;;  %1113 = vmatmul.bf16.gmra.mxu3 %v886_v35  ;;  %v2803_v35 = vperm.slane %v915_v28, 1 }
 0x16b   : > { %v791_v36 = vpop.f32.mrf.mxu1 }
 0x16c   : > { %v792_v38 = vadd.f32 %v2700_v58, %v791_v36  ;;  %v869_v36 = vmax.f32 %v817_v32, 0.0 }
 0x16e   : > { %v859_v41 = vmax.f32 %v792_v38, 0.0  ;;  %v870_v38 = vmax.f32 %v819_v33, 0.0 }
 0x16f   : > { %v2751_v44 = vpop.f32.mrf.mxu2 }
 0x170   : > { %v892_v1 = vpack.c.bf16 %v870_v38, %v869_v36 }
 0x173   : > { %v793_v39 = vpop.f32.mrf.mxu1 }
 0x174   : > { %v794_v40 = vadd.f32 %v2700_v58, %v793_v39 }
 0x176   : > { %v860_v42 = vmax.f32 %v794_v40, 0.0 }
 0x177   : > { %v2760_v49 = vpop.f32.mrf.mxu2 }
 0x178   : > { %v887_v43 = vpack.c.bf16 %v860_v42, %v859_v41 }
 0x17a   : > { %1029 = vmatmul.bf16.gmra.mxu2 %v887_v43  ;;  %1118 = vmatmul.bf16.gmra.mxu3 %v887_v43 }
 0x17b   : > { %v796_v47 = vpop.f32.mrf.mxu1 }
 0x17c   : > { %v797_v48 = vadd.f32 %v2700_v58, %v796_v47 }
 0x17e   : > { %v861_v52 = vmax.f32 %v797_v48, 0.0 }
 0x17f   : > { %v2763_v56 = vpop.f32.mrf.mxu2 }
 0x183   : > { %v798_v50 = vpop.f32.mrf.mxu1 }
 0x184   : > { %v799_v51 = vadd.f32 %v2700_v58, %v798_v50 }
 0x186   : > { %v862_v53 = vmax.f32 %v799_v51, 0.0 }
 0x187   : > { %v2773_v0 = vpop.f32.mrf.mxu2 }
 0x188   : > { %v888_v54 = vpack.c.bf16 %v862_v53, %v861_v52 }
 0x18a   : > { %1034 = vmatmul.bf16.gmra.mxu2 %v888_v54  ;;  %1123 = vmatmul.bf16.gmra.mxu3 %v888_v54  ;;  %v822_v54 = vadd.f32 %v2700_v58, %v2723_v12 }
 0x18b   : > { %v801_v55 = vpop.f32.mrf.mxu1 }
 0x18c   : > { %v802_v60 = vadd.f32 %v2700_v58, %v801_v55  ;;  %v824_v55 = vadd.f32 %v2700_v58, %v2725_v15  ;;  %v871_v57 = vmax.f32 %v822_v54, 0.0 }
 0x18e   : > { %v863_v62 = vmax.f32 %v802_v60, 0.0  ;;  %v872_v59 = vmax.f32 %v824_v55, 0.0 }
 0x18f   : > { %v2781_v7 = vpop.f32.mrf.mxu2 }
 0x193   : > { %v803_v22 = vpop.f32.mrf.mxu1 }
 0x194   : > { %v804_v61 = vadd.f32 %v2700_v58, %v803_v22 }
 0x196   : > { %v864_v63 = vmax.f32 %v804_v61, 0.0 }
 0x197   : > { %v2788_v17 = vpop.f32.mrf.mxu2 }
 0x198   : > { %v889_v2 = vpack.c.bf16 %v864_v63, %v863_v62 }
 0x19a   : > { %1039 = vmatmul.bf16.gmra.mxu2 %v889_v2  ;;  %1128 = vmatmul.bf16.gmra.mxu3 %v889_v2 }
 0x19b   : > { %v806_v3 = vpop.f32.mrf.mxu1 }
 0x19c   : > { %v807_v8 = vadd.f32 %v2700_v58, %v806_v3  ;;  %v893_v3 = vpack.c.bf16 %v872_v59, %v871_v57  ;;  %v837_v57 = vadd.f32 %v2700_v58, %v2760_v49  ;;  %v839_v59 = vadd.f32 %v2700_v58, %v2763_v56 }
 0x19e   : > { %v865_v11 = vmax.f32 %v807_v8, 0.0 }
 0x19f   : > { %v2792_v23 = vpop.f32.mrf.mxu2 }
 0x1a3   : > { %v808_v9 = vpop.f32.mrf.mxu1 }
 0x1a4   : > { %v809_v10 = vadd.f32 %v2700_v58, %v808_v9 }
 0x1a6   : > { %v866_v13 = vmax.f32 %v809_v10, 0.0 }
 0x1a8   : > { %v890_v16 = vpack.c.bf16 %v866_v13, %v865_v11  ;;  %v827_v13 = vadd.f32 %v2700_v58, %v2735_v26 }
 0x1aa   : > { %1044 = vmatmul.bf16.gmra.mxu2 %v890_v16  ;;  %1133 = vmatmul.bf16.gmra.mxu3 %v890_v16  ;;  %v873_v16 = vmax.f32 %v827_v13, 0.0  ;;  %v842_v13 = vadd.f32 %v2700_v58, %v2773_v0 }
 0x1ab   : > { %v811_v18 = vpop.f32.mrf.mxu1 }
 0x1ac   : > { %v812_v19 = vadd.f32 %v2700_v58, %v811_v18  ;;  %v874_v18 = vmax.f32 %v829_v14, 0.0  ;;  %v844_v14 = vadd.f32 %v2700_v58, %v2781_v7 }
 0x1ae   : > { %v867_v24 = vmax.f32 %v812_v19, 0.0  ;;  %v894_v28 = vpack.c.bf16 %v874_v18, %v873_v16  ;;  %v879_v16 = vmax.f32 %v842_v13, 0.0  ;;  %v880_v18 = vmax.f32 %v844_v14, 0.0 }
 0x1b3   : > { %v813_v20 = vpop.f32.mrf.mxu1 }
 0x1b4   : > { %v814_v21 = vadd.f32 %v2700_v58, %v813_v20 }
 0x1b6   : > { %v868_v25 = vmax.f32 %v814_v21, 0.0 }
 0x1b8   : > { %v891_v27 = vpack.c.bf16 %v868_v25, %v867_v24 }
 0x1ba   : > { %1049 = vmatmul.bf16.gmra.mxu2 %v891_v27  ;;  %1138 = vmatmul.bf16.gmra.mxu3 %v891_v27 }
 0x1bd   : > { %v1010_v29 = vpop.f32.mrf.mxu2  ;;  %v1099_v31 = vpop.f32.mrf.mxu3 }
 0x1be   : > { %v1011_v39 = vadd.f32 %v1010_v29, %v2801_v34  ;;  %v1100_v40 = vadd.f32 %v1099_v31, %v2803_v35 }
 0x1c0   : > { %v1179_v46 = vmax.f32 %v1011_v39, 0.0  ;;  %v1180_v47 = vmax.f32 %v1100_v40, 0.0  ;;  %v832_v39 = vadd.f32 %v2700_v58, %v2747_v37  ;;  %v834_v40 = vadd.f32 %v2700_v58, %v2751_v44 }
 0x1c5   : > { %v1012_v41 = vpop.f32.mrf.mxu2  ;;  %v1101_v42 = vpop.f32.mrf.mxu3 }
 0x1c6   : > { %v1013_v43 = vadd.f32 %v1012_v41, %v2801_v34  ;;  %v1102_v45 = vadd.f32 %v1101_v42, %v2803_v35  ;;  %v875_v41 = vmax.f32 %v832_v39, 0.0  ;;  %v876_v42 = vmax.f32 %v834_v40, 0.0 }
 0x1c8   : > { %v1181_v4 = vmax.f32 %v1013_v43, 0.0  ;;  %v1182_v48 = vmax.f32 %v1102_v45, 0.0 }
 0x1ca   : > { %1054 = vmatmul.bf16.gmra.mxu2 %v892_v1  ;;  %1143 = vmatmul.bf16.gmra.mxu3 %v892_v1  ;;  %v1243_v50 = vpack.c.bf16 %v1181_v4, %v1179_v46  ;;  %v1244_v51 = vpack.c.bf16 %v1182_v48, %v1180_v47  ;;  %v895_v48 = vpack.c.bf16 %v876_v42, %v875_v41 }
 0x1cc   : > { %1415 = vmatmul.bf16.vlgmr.msrb.gmra.mxu0 %v1243_v50  ;;  %1504 = vmatmul.bf16.vlgmr.msrb.gmra.mxu1 %v1244_v51 }
 0x1cd   : > { %v1015_v52 = vpop.f32.mrf.mxu2  ;;  %v1104_v53 = vpop.f32.mrf.mxu3 }
 0x1ce   : > { %v1016_v60 = vadd.f32 %v1015_v52, %v2801_v34  ;;  %v1105_v22 = vadd.f32 %v1104_v53, %v2803_v35 }
 0x1d0   : > { %v1183_v5 = vmax.f32 %v1016_v60, 0.0  ;;  %v1184_v6 = vmax.f32 %v1105_v22, 0.0  ;;  %v877_v60 = vmax.f32 %v837_v57, 0.0  ;;  %v878_v22 = vmax.f32 %v839_v59, 0.0 }
 0x1d5   : > { %v1017_v61 = vpop.f32.mrf.mxu2  ;;  %v1106_v62 = vpop.f32.mrf.mxu3 }
 0x1d6   : > { %v1018_v63 = vadd.f32 %v1017_v61, %v2801_v34  ;;  %v1107_v2 = vadd.f32 %v1106_v62, %v2803_v35 }
 0x1d8   : > { %v1185_v8 = vmax.f32 %v1018_v63, 0.0  ;;  %v1186_v12 = vmax.f32 %v1107_v2, 0.0 }
 0x1da   : > { %1059 = vmatmul.bf16.gmra.mxu2 %v893_v3  ;;  %1148 = vmatmul.bf16.gmra.mxu3 %v893_v3  ;;  %v1245_v15 = vpack.c.bf16 %v1185_v8, %v1183_v5  ;;  %v1246_v9 = vpack.c.bf16 %v1186_v12, %v1184_v6  ;;  %v896_v6 = vpack.c.bf16 %v878_v22, %v877_v60 }
 0x1dc   : > { %1420 = vmatmul.bf16.gmra.mxu0 %v1245_v15  ;;  %1509 = vmatmul.bf16.gmra.mxu1 %v1246_v9 }
 0x1dd   : > { %v1020_v10 = vpop.f32.mrf.mxu2  ;;  %v1109_v11 = vpop.f32.mrf.mxu3 }
 0x1de   : > { %v1021_v19 = vadd.f32 %v1020_v10, %v2801_v34  ;;  %v1110_v20 = vadd.f32 %v1109_v11, %v2803_v35 }
 0x1e0   : > { %v1187_v29 = vmax.f32 %v1021_v19, 0.0  ;;  %v1188_v31 = vmax.f32 %v1110_v20, 0.0 }
 0x1e5   : > { %v1022_v21 = vpop.f32.mrf.mxu2  ;;  %v1111_v24 = vpop.f32.mrf.mxu3 }
 0x1e6   : > { %v1023_v25 = vadd.f32 %v1022_v21, %v2801_v34  ;;  %v1112_v27 = vadd.f32 %v1111_v24, %v2803_v35 }
 0x1e8   : > { %v1189_v32 = vmax.f32 %v1023_v25, 0.0  ;;  %v1190_v26 = vmax.f32 %v1112_v27, 0.0 }
 0x1ea   : > { %1064 = vmatmul.bf16.gmra.mxu2 %v894_v28  ;;  %1153 = vmatmul.bf16.gmra.mxu3 %v894_v28  ;;  %v1247_v30 = vpack.c.bf16 %v1189_v32, %v1187_v29  ;;  %v1248_v33 = vpack.c.bf16 %v1190_v26, %v1188_v31  ;;  %v897_v28 = vpack.c.bf16 %v880_v18, %v879_v16 }
 0x1ec   : > { %1425 = vmatmul.bf16.gmra.mxu0 %v1247_v30  ;;  %1514 = vmatmul.bf16.gmra.mxu1 %v1248_v33 }
 0x1ed   : > { %v1025_v36 = vpop.f32.mrf.mxu2  ;;  %v1114_v38 = vpop.f32.mrf.mxu3 }
 0x1ee   : > { %v1026_v43 = vadd.f32 %v1025_v36, %v2801_v34  ;;  %v1115_v45 = vadd.f32 %v1114_v38, %v2803_v35  ;;  %v847_v36 = vadd.f32 %v2700_v58, %v2788_v17  ;;  %v849_v38 = vadd.f32 %v2700_v58, %v2792_v23 }
 0x1f0   : > { %v1191_v50 = vmax.f32 %v1026_v43, 0.0  ;;  %v1192_v51 = vmax.f32 %v1115_v45, 0.0  ;;  %v881_v39 = vmax.f32 %v847_v36, 0.0  ;;  %v882_v40 = vmax.f32 %v849_v38, 0.0 }
 0x1f5   : > { %v1027_v1 = vpop.f32.mrf.mxu2  ;;  %v1116_v46 = vpop.f32.mrf.mxu3 }
 0x1f6   : > { %v1028_v47 = vadd.f32 %v1027_v1, %v2801_v34  ;;  %v1117_v4 = vadd.f32 %v1116_v46, %v2803_v35 }
 0x1f8   : > { %v1193_v52 = vmax.f32 %v1028_v47, 0.0  ;;  %v1194_v37 = vmax.f32 %v1117_v4, 0.0  ;;  %v898_v47 = vpack.c.bf16 %v882_v40, %v881_v39 }
 0x1fa   : > { %1069 = vmatmul.bf16.gmra.mxu2 %v895_v48  ;;  %1158 = vmatmul.bf16.gmra.mxu3 %v895_v48  ;;  %v1249_v44 = vpack.c.bf16 %v1193_v52, %v1191_v50  ;;  %v1250_v53 = vpack.c.bf16 %v1194_v37, %v1192_v51 }
 0x1fc   : > { %1430 = vmatmul.bf16.gmra.mxu0 %v1249_v44  ;;  %1519 = vmatmul.bf16.gmra.mxu1 %v1250_v53 }
 0x1fd   : > { %v1030_v54 = vpop.f32.mrf.mxu2  ;;  %v1119_v55 = vpop.f32.mrf.mxu3 }
 0x1fe   : > { %v1031_v61 = vadd.f32 %v1030_v54, %v2801_v34  ;;  %v1120_v62 = vadd.f32 %v1119_v55, %v2803_v35 }
 0x200   : > { %v1195_v8 = vmax.f32 %v1031_v61, 0.0  ;;  %v1196_v12 = vmax.f32 %v1120_v62, 0.0 }
 0x205   : > { %v1032_v63 = vpop.f32.mrf.mxu2  ;;  %v1121_v2 = vpop.f32.mrf.mxu3 }
 0x206   : > { %v1033_v3 = vadd.f32 %v1032_v63, %v2801_v34  ;;  %v1122_v5 = vadd.f32 %v1121_v2, %v2803_v35 }
 0x208   : > { %v1197_v15 = vmax.f32 %v1033_v3, 0.0  ;;  %v1198_v49 = vmax.f32 %v1122_v5, 0.0 }
 0x20a   : > { %v1251_v9 = vpack.c.bf16 %v1197_v15, %v1195_v8  ;;  %1074 = vmatmul.bf16.gmra.mxu2 %v896_v6  ;;  %1163 = vmatmul.bf16.gmra.mxu3 %v896_v6  ;;  %v1252_v56 = vpack.c.bf16 %v1198_v49, %v1196_v12 }
 0x20c   : > { %1435 = vmatmul.bf16.gmra.mxu0 %v1251_v9  ;;  %1524 = vmatmul.bf16.gmra.mxu1 %v1252_v56 }
 0x20d   : > { %v1035_v10 = vpop.f32.mrf.mxu2  ;;  %v1124_v11 = vpop.f32.mrf.mxu3 }
 0x20e   : > { %v1036_v19 = vadd.f32 %v1035_v10, %v2801_v34  ;;  %v1125_v20 = vadd.f32 %v1124_v11, %v2803_v35 }
 0x210   : > { %v1199_v29 = vmax.f32 %v1036_v19, 0.0  ;;  %v1200_v31 = vmax.f32 %v1125_v20, 0.0  ;;  %v2868_v19 = vld [vmem:[%s2993_s8] ss:$0 sm:$0xff] }
 0x215   : > { %v1037_v21 = vpop.f32.mrf.mxu2  ;;  %v1126_v24 = vpop.f32.mrf.mxu3 }
 0x216   : > { %v1038_v25 = vadd.f32 %v1037_v21, %v2801_v34  ;;  %v1127_v27 = vadd.f32 %v1126_v24, %v2803_v35 }
 0x218   : > { %v1201_v32 = vmax.f32 %v1038_v25, 0.0  ;;  %v1202_v0 = vmax.f32 %v1127_v27, 0.0 }
 0x21a   : > { %v1253_v26 = vpack.c.bf16 %v1201_v32, %v1199_v29  ;;  %v1254_v30 = vpack.c.bf16 %v1202_v0, %v1200_v31  ;;  %1079 = vmatmul.bf16.gmra.mxu2 %v897_v28  ;;  %1168 = vmatmul.bf16.gmra.mxu3 %v897_v28 }
 0x21c   : > { %1440 = vmatmul.bf16.gmra.mxu0 %v1253_v26  ;;  %1529 = vmatmul.bf16.gmra.mxu1 %v1254_v30 }
 0x21d   : > { %v1040_v7 = vpop.f32.mrf.mxu2  ;;  %v1129_v33 = vpop.f32.mrf.mxu3 }
 0x21e   : > { %v1041_v41 = vadd.f32 %v1040_v7, %v2801_v34  ;;  %v1130_v42 = vadd.f32 %v1129_v33, %v2803_v35 }
 0x220   : > { %v1203_v4 = vmax.f32 %v1041_v41, 0.0  ;;  %v1204_v48 = vmax.f32 %v1130_v42, 0.0 }
 0x225   : > { %v1042_v43 = vpop.f32.mrf.mxu2  ;;  %v1131_v45 = vpop.f32.mrf.mxu3 }
 0x226   : > { %v1043_v1 = vadd.f32 %v1042_v43, %v2801_v34  ;;  %v1132_v46 = vadd.f32 %v1131_v45, %v2803_v35 }
 0x228   : > { %v1205_v50 = vmax.f32 %v1043_v1, 0.0  ;;  %v1206_v17 = vmax.f32 %v1132_v46, 0.0 }
 0x22a   : > { %v1255_v51 = vpack.c.bf16 %v1205_v50, %v1203_v4  ;;  %v1256_v52 = vpack.c.bf16 %v1206_v17, %v1204_v48  ;;  %1084 = vmatmul.bf16.gmra.mxu2 %v898_v47  ;;  %1173 = vmatmul.bf16.gmra.mxu3 %v898_v47 }
 0x22c   : > { %1445 = vmatmul.bf16.gmra.mxu0 %v1255_v51  ;;  %1534 = vmatmul.bf16.gmra.mxu1 %v1256_v52 }
 0x22d   : > { %v1045_v58 = vpop.f32.mrf.mxu2  ;;  %v1134_v23 = vpop.f32.mrf.mxu3 }
 0x22e   : > { %v1046_v37 = vadd.f32 %v1045_v58, %v2801_v34  ;;  %v1135_v44 = vadd.f32 %v1134_v23, %v2803_v35 }
 0x230   : > { %v1207_v59 = vmax.f32 %v1046_v37, 0.0  ;;  %v1208_v60 = vmax.f32 %v1135_v44, 0.0 }
 0x235   : > { %v1047_v53 = vpop.f32.mrf.mxu2  ;;  %v1136_v54 = vpop.f32.mrf.mxu3 }
 0x236   : > { %v1048_v55 = vadd.f32 %v1047_v53, %v2801_v34  ;;  %v1137_v57 = vadd.f32 %v1136_v54, %v2803_v35 }
 0x238   : > { %v1209_v22 = vmax.f32 %v1048_v55, 0.0  ;;  %v1210_v61 = vmax.f32 %v1137_v57, 0.0 }
 0x23a   : > { %v1257_v62 = vpack.c.bf16 %v1209_v22, %v1207_v59  ;;  %v1258_v63 = vpack.c.bf16 %v1210_v61, %v1208_v60 }
 0x23c   : > { %1450 = vmatmul.bf16.gmra.mxu0 %v1257_v62  ;;  %1539 = vmatmul.bf16.gmra.mxu1 %v1258_v63 }
 0x23d   : > { %v1050_v2 = vpop.f32.mrf.mxu2  ;;  %v1139_v3 = vpop.f32.mrf.mxu3 }
 0x23e   : > { %v1051_v5 = vadd.f32 %v1050_v2, %v2801_v34  ;;  %v1140_v6 = vadd.f32 %v1139_v3, %v2803_v35 }
 0x240   : > { %v1211_v9 = vmax.f32 %v1051_v5, 0.0  ;;  %v1212_v56 = vmax.f32 %v1140_v6, 0.0 }
 0x245   : > { %v1052_v8 = vpop.f32.mrf.mxu2  ;;  %v1141_v12 = vpop.f32.mrf.mxu3 }
 0x246   : > { %v1053_v15 = vadd.f32 %v1052_v8, %v2801_v34  ;;  %v1142_v49 = vadd.f32 %v1141_v12, %v2803_v35 }
 0x248   : > { %v1213_v10 = vmax.f32 %v1053_v15, 0.0  ;;  %v1214_v11 = vmax.f32 %v1142_v49, 0.0 }
 0x249   : > { %v1416_v13 = vpop.f32.mrf.mxu0  ;;  %v1505_v14 = vpop.f32.mrf.mxu1 }
 0x24a   : > { %v1259_v16 = vpack.c.bf16 %v1213_v10, %v1211_v9  ;;  %v1260_v18 = vpack.c.bf16 %v1214_v11, %v1212_v56  ;;  %v1417_v24 = vadd.f32 %v2868_v19, %v1416_v13 }
 0x24c   : > { %1455 = vmatmul.bf16.gmra.mxu0 %v1259_v16  ;;  %1544 = vmatmul.bf16.gmra.mxu1 %v1260_v18  ;;  %v1506_v29 = vadd.f32 %v1505_v14, %v1417_v24 }
 0x24d   : > { %v1055_v20 = vpop.f32.mrf.mxu2  ;;  %v1144_v21 = vpop.f32.mrf.mxu3 }
 0x24e   : > { %v1056_v31 = vadd.f32 %v1055_v20, %v2801_v34  ;;  %v1145_v32 = vadd.f32 %v1144_v21, %v2803_v35 }
 0x250   : > { %v1215_v38 = vmax.f32 %v1056_v31, 0.0  ;;  %v1216_v39 = vmax.f32 %v1145_v32, 0.0 }
 0x251   : > { %v1418_v25 = vpop.f32.mrf.mxu0  ;;  %v1507_v27 = vpop.f32.mrf.mxu1 }
 0x252   : > { %v1419_v28 = vadd.f32 %v2868_v19, %v1418_v25 }
 0x254   : > { %v1508_v0 = vadd.f32 %v1507_v27, %v1419_v28 }
 0x255   : > { %v1057_v26 = vpop.f32.mrf.mxu2  ;;  %v1146_v30 = vpop.f32.mrf.mxu3 }
 0x256   : > { %v2066_v7 = vpack.c.bf16 %v1508_v0, %v1506_v29  ;;  %v1058_v33 = vadd.f32 %v1057_v26, %v2801_v34  ;;  %v1147_v36 = vadd.f32 %v1146_v30, %v2803_v35 }
 0x258   : > { %2067 = vst [vmem:[%s2879_s16] sm:$0xff] %v2066_v7   ;;  %v1217_v40 = vmax.f32 %v1058_v33, 0.0  ;;  %v1218_v41 = vmax.f32 %v1147_v36, 0.0 }
 0x259   : > { %v1421_v42 = vpop.f32.mrf.mxu0  ;;  %v1510_v43 = vpop.f32.mrf.mxu1 }
 0x25a   : > { %v1261_v45 = vpack.c.bf16 %v1217_v40, %v1215_v38  ;;  %v1262_v1 = vpack.c.bf16 %v1218_v41, %v1216_v39  ;;  %v1422_v4 = vadd.f32 %v2868_v19, %v1421_v42 }
 0x25c   : > { %1460 = vmatmul.bf16.gmra.mxu0 %v1261_v45  ;;  %1549 = vmatmul.bf16.gmra.mxu1 %v1262_v1  ;;  %v1511_v51 = vadd.f32 %v1510_v43, %v1422_v4 }
 0x25d   : > { %v1060_v46 = vpop.f32.mrf.mxu2  ;;  %v1149_v47 = vpop.f32.mrf.mxu3 }
 0x25e   : > { %v1061_v52 = vadd.f32 %v1060_v46, %v2801_v34  ;;  %v1150_v58 = vadd.f32 %v1149_v47, %v2803_v35 }
 0x260   : > { %v1219_v57 = vmax.f32 %v1061_v52, 0.0  ;;  %v1220_v59 = vmax.f32 %v1150_v58, 0.0 }
 0x261   : > { %v1423_v48 = vpop.f32.mrf.mxu0  ;;  %v1512_v50 = vpop.f32.mrf.mxu1 }
 0x262   : > { %v1424_v17 = vadd.f32 %v2868_v19, %v1423_v48 }
 0x264   : > { %v1513_v23 = vadd.f32 %v1512_v50, %v1424_v17 }
 0x265   : > { %v1062_v37 = vpop.f32.mrf.mxu2  ;;  %v1151_v44 = vpop.f32.mrf.mxu3 }
 0x266   : > { %v2071_v53 = vpack.c.bf16 %v1513_v23, %v1511_v51  ;;  %v1063_v54 = vadd.f32 %v1062_v37, %v2801_v34  ;;  %v1152_v55 = vadd.f32 %v1151_v44, %v2803_v35 }
 0x268   : > { %2143 = vst [vmem:[%s2879_s16 + $0x8] sm:$0xff] %v2071_v53   ;;  %v1221_v60 = vmax.f32 %v1063_v54, 0.0  ;;  %v1222_v22 = vmax.f32 %v1152_v55, 0.0 }
 0x269   : > { %v1426_v61 = vpop.f32.mrf.mxu0  ;;  %v1515_v62 = vpop.f32.mrf.mxu1 }
 0x26a   : > { %v1263_v63 = vpack.c.bf16 %v1221_v60, %v1219_v57  ;;  %v1264_v2 = vpack.c.bf16 %v1222_v22, %v1220_v59  ;;  %v1427_v6 = vadd.f32 %v2868_v19, %v1426_v61 }
 0x26c   : > { %1465 = vmatmul.bf16.gmra.mxu0 %v1263_v63  ;;  %1554 = vmatmul.bf16.gmra.mxu1 %v1264_v2  ;;  %v1516_v49 = vadd.f32 %v1515_v62, %v1427_v6 }
 0x26d   : > { %v1065_v3 = vpop.f32.mrf.mxu2  ;;  %v1154_v5 = vpop.f32.mrf.mxu3 }
 0x26e   : > { %v1066_v9 = vadd.f32 %v1065_v3, %v2801_v34  ;;  %v1155_v56 = vadd.f32 %v1154_v5, %v2803_v35 }
 0x270   : > { %v1223_v20 = vmax.f32 %v1066_v9, 0.0  ;;  %v1224_v21 = vmax.f32 %v1155_v56, 0.0 }
 0x271   : > { %v1428_v8 = vpop.f32.mrf.mxu0  ;;  %v1517_v12 = vpop.f32.mrf.mxu1 }
 0x272   : > { %v1429_v15 = vadd.f32 %v2868_v19, %v1428_v8 }
 0x274   : > { %v1518_v10 = vadd.f32 %v1517_v12, %v1429_v15 }
 0x275   : > { %v1067_v11 = vpop.f32.mrf.mxu2  ;;  %v1156_v13 = vpop.f32.mrf.mxu3 }
 0x276   : > { %v2076_v14 = vpack.c.bf16 %v1518_v10, %v1516_v49  ;;  %v1068_v16 = vadd.f32 %v1067_v11, %v2801_v34  ;;  %v1157_v18 = vadd.f32 %v1156_v13, %v2803_v35 }
 0x278   : > { %2144 = vst [vmem:[%s2879_s16 + $0x10] sm:$0xff] %v2076_v14   ;;  %v1225_v24 = vmax.f32 %v1068_v16, 0.0  ;;  %v1226_v25 = vmax.f32 %v1157_v18, 0.0 }
 0x279   : > { %v1431_v27 = vpop.f32.mrf.mxu0  ;;  %v1520_v28 = vpop.f32.mrf.mxu1 }
 0x27a   : > { %v1265_v29 = vpack.c.bf16 %v1225_v24, %v1223_v20  ;;  %v1266_v31 = vpack.c.bf16 %v1226_v25, %v1224_v21  ;;  %v1432_v26 = vadd.f32 %v2868_v19, %v1431_v27 }
 0x27c   : > { %1470 = vmatmul.bf16.gmra.mxu0 %v1265_v29  ;;  %1559 = vmatmul.bf16.gmra.mxu1 %v1266_v31  ;;  %v1521_v36 = vadd.f32 %v1520_v28, %v1432_v26 }
 0x27d   : > { %v1070_v32 = vpop.f32.mrf.mxu2  ;;  %v1159_v0 = vpop.f32.mrf.mxu3 }
 0x27e   : > { %v1071_v38 = vadd.f32 %v1070_v32, %v2801_v34  ;;  %v1160_v39 = vadd.f32 %v1159_v0, %v2803_v35 }
 0x280   : > { %v1227_v46 = vmax.f32 %v1071_v38, 0.0  ;;  %v1228_v47 = vmax.f32 %v1160_v39, 0.0 }
 0x281   : > { %v1433_v30 = vpop.f32.mrf.mxu0  ;;  %v1522_v7 = vpop.f32.mrf.mxu1 }
 0x282   : > { %v1434_v33 = vadd.f32 %v2868_v19, %v1433_v30 }
 0x284   : > { %v1523_v40 = vadd.f32 %v1522_v7, %v1434_v33 }
 0x285   : > { %v1072_v41 = vpop.f32.mrf.mxu2  ;;  %v1161_v42 = vpop.f32.mrf.mxu3 }
 0x286   : > { %v2081_v43 = vpack.c.bf16 %v1523_v40, %v1521_v36  ;;  %v1073_v45 = vadd.f32 %v1072_v41, %v2801_v34  ;;  %v1162_v1 = vadd.f32 %v1161_v42, %v2803_v35 }
 0x288   : > { %2145 = vst [vmem:[%s2879_s16 + $0x18] sm:$0xff] %v2081_v43   ;;  %v1229_v4 = vmax.f32 %v1073_v45, 0.0  ;;  %v1230_v48 = vmax.f32 %v1162_v1, 0.0 }
 0x289   : > { %v1436_v50 = vpop.f32.mrf.mxu0  ;;  %v1525_v17 = vpop.f32.mrf.mxu1 }
 0x28a   : > { %v1267_v51 = vpack.c.bf16 %v1229_v4, %v1227_v46  ;;  %v1268_v52 = vpack.c.bf16 %v1230_v48, %v1228_v47  ;;  %v1437_v37 = vadd.f32 %v2868_v19, %v1436_v50 }
 0x28c   : > { %1475 = vmatmul.bf16.gmra.mxu0 %v1267_v51  ;;  %1564 = vmatmul.bf16.gmra.mxu1 %v1268_v52  ;;  %v1526_v55 = vadd.f32 %v1525_v17, %v1437_v37 }
 0x28d   : > { %v1075_v58 = vpop.f32.mrf.mxu2  ;;  %v1164_v23 = vpop.f32.mrf.mxu3 }
 0x28e   : > { %v1076_v57 = vadd.f32 %v1075_v58, %v2801_v34  ;;  %v1165_v59 = vadd.f32 %v1164_v23, %v2803_v35 }
 0x290   : > { %v1231_v3 = vmax.f32 %v1076_v57, 0.0  ;;  %v1232_v5 = vmax.f32 %v1165_v59, 0.0 }
 0x291   : > { %v1438_v44 = vpop.f32.mrf.mxu0  ;;  %v1527_v53 = vpop.f32.mrf.mxu1 }
 0x292   : > { %v1439_v54 = vadd.f32 %v2868_v19, %v1438_v44 }
 0x294   : > { %v1528_v60 = vadd.f32 %v1527_v53, %v1439_v54 }
 0x295   : > { %v1077_v22 = vpop.f32.mrf.mxu2  ;;  %v1166_v61 = vpop.f32.mrf.mxu3 }
 0x296   : > { %v2086_v62 = vpack.c.bf16 %v1528_v60, %v1526_v55  ;;  %v1078_v63 = vadd.f32 %v1077_v22, %v2801_v34  ;;  %v1167_v2 = vadd.f32 %v1166_v61, %v2803_v35 }
 0x298   : > { %2146 = vst [vmem:[%s2879_s16 + $0x20] sm:$0xff] %v2086_v62   ;;  %v1233_v6 = vmax.f32 %v1078_v63, 0.0  ;;  %v1234_v8 = vmax.f32 %v1167_v2, 0.0 }
 0x299   : > { %v1441_v12 = vpop.f32.mrf.mxu0  ;;  %v1530_v15 = vpop.f32.mrf.mxu1 }
 0x29a   : > { %v1269_v49 = vpack.c.bf16 %v1233_v6, %v1231_v3  ;;  %v1270_v9 = vpack.c.bf16 %v1234_v8, %v1232_v5  ;;  %v1442_v11 = vadd.f32 %v2868_v19, %v1441_v12 }
 0x29c   : > { %1480 = vmatmul.bf16.gmra.mxu0 %v1269_v49  ;;  %1569 = vmatmul.bf16.gmra.mxu1 %v1270_v9  ;;  %v1531_v18 = vadd.f32 %v1530_v15, %v1442_v11 }
 0x29d   : > { %v1080_v56 = vpop.f32.mrf.mxu2  ;;  %v1169_v10 = vpop.f32.mrf.mxu3 }
 0x29e   : > { %v1081_v20 = vadd.f32 %v1080_v56, %v2801_v34  ;;  %v1170_v21 = vadd.f32 %v1169_v10, %v2803_v35 }
 0x2a0   : > { %v1235_v32 = vmax.f32 %v1081_v20, 0.0  ;;  %v1236_v0 = vmax.f32 %v1170_v21, 0.0 }
 0x2a1   : > { %v1443_v13 = vpop.f32.mrf.mxu0  ;;  %v1532_v14 = vpop.f32.mrf.mxu1 }
 0x2a2   : > { %v1444_v16 = vadd.f32 %v2868_v19, %v1443_v13 }
 0x2a4   : > { %v1533_v24 = vadd.f32 %v1532_v14, %v1444_v16 }
 0x2a5   : > { %v1082_v25 = vpop.f32.mrf.mxu2  ;;  %v1171_v27 = vpop.f32.mrf.mxu3 }
 0x2a6   : > { %v2091_v28 = vpack.c.bf16 %v1533_v24, %v1531_v18  ;;  %v1083_v29 = vadd.f32 %v1082_v25, %v2801_v34  ;;  %v1172_v31 = vadd.f32 %v1171_v27, %v2803_v35 }
 0x2a8   : > { %2147 = vst [vmem:[%s2879_s16 + $0x28] sm:$0xff] %v2091_v28   ;;  %v1237_v26 = vmax.f32 %v1083_v29, 0.0  ;;  %v1238_v30 = vmax.f32 %v1172_v31, 0.0 }
 0x2a9   : > { %v1446_v7 = vpop.f32.mrf.mxu0  ;;  %v1535_v33 = vpop.f32.mrf.mxu1 }
 0x2aa   : > { %v1271_v36 = vpack.c.bf16 %v1237_v26, %v1235_v32  ;;  %v1272_v38 = vpack.c.bf16 %v1238_v30, %v1236_v0  ;;  %v1447_v41 = vadd.f32 %v2868_v19, %v1446_v7 }
 0x2ac   : > { %1485 = vmatmul.bf16.gmra.mxu0 %v1271_v36  ;;  %1574 = vmatmul.bf16.gmra.mxu1 %v1272_v38  ;;  %v1536_v1 = vadd.f32 %v1535_v33, %v1447_v41 }
 0x2ad   : > { %v1085_v39 = vpop.f32.mrf.mxu2  ;;  %v1174_v40 = vpop.f32.mrf.mxu3 }
 0x2ae   : > { %v1086_v46 = vadd.f32 %v1085_v39, %v2801_v34  ;;  %v1175_v47 = vadd.f32 %v1174_v40, %v2803_v35 }
 0x2b0   : > { %v1239_v58 = vmax.f32 %v1086_v46, 0.0  ;;  %v1240_v23 = vmax.f32 %v1175_v47, 0.0 }
 0x2b1   : > { %v1448_v42 = vpop.f32.mrf.mxu0  ;;  %v1537_v43 = vpop.f32.mrf.mxu1 }
 0x2b2   : > { %v1449_v45 = vadd.f32 %v2868_v19, %v1448_v42 }
 0x2b4   : > { %v1538_v4 = vadd.f32 %v1537_v43, %v1449_v45 }
 0x2b5   : > { %v1087_v48 = vpop.f32.mrf.mxu2  ;;  %v1176_v50 = vpop.f32.mrf.mxu3 }
 0x2b6   : > { %v2096_v17 = vpack.c.bf16 %v1538_v4, %v1536_v1  ;;  %v1088_v51 = vadd.f32 %v1087_v48, %v2801_v34  ;;  %v1177_v52 = vadd.f32 %v1176_v50, %v2803_v35 }
 0x2b8   : > { %2148 = vst [vmem:[%s2879_s16 + $0x30] sm:$0xff] %v2096_v17   ;;  %v1241_v37 = vmax.f32 %v1088_v51, 0.0  ;;  %v1242_v44 = vmax.f32 %v1177_v52, 0.0 }
 0x2b9   : > { %v1451_v53 = vpop.f32.mrf.mxu0  ;;  %v1540_v54 = vpop.f32.mrf.mxu1 }
 0x2ba   : > { %v1273_v55 = vpack.c.bf16 %v1241_v37, %v1239_v58  ;;  %v1274_v57 = vpack.c.bf16 %v1242_v44, %v1240_v23  ;;  %v1452_v59 = vadd.f32 %v2868_v19, %v1451_v53 }
 0x2bc   : > { %1490 = vmatmul.bf16.gmra.mxu0 %v1273_v55  ;;  %1579 = vmatmul.bf16.vlgmr.msra.gmra.mxu3 %v1274_v57  ;;  %v1541_v35 = vadd.f32 %v1540_v54, %v1452_v59 }
 0x2c1   : > { %v1453_v60 = vpop.f32.mrf.mxu0  ;;  %v1542_v22 = vpop.f32.mrf.mxu1 }
 0x2c2   : > { %v1454_v34 = vadd.f32 %v2868_v19, %v1453_v60 }
 0x2c4   : > { %v1543_v61 = vadd.f32 %v1542_v22, %v1454_v34 }
 0x2c6   : > { %v2101_v62 = vpack.c.bf16 %v1543_v61, %v1541_v35 }
 0x2c8   : > { %2149 = vst [vmem:[%s2879_s16 + $0x38] sm:$0xff] %v2101_v62  }
 0x2c9   : > { %v1456_v63 = vpop.f32.mrf.mxu0  ;;  %v1545_v2 = vpop.f32.mrf.mxu1 }
 0x2ca   : > { %v1457_v3 = vadd.f32 %v2868_v19, %v1456_v63 }
 0x2cc   : > { %v1546_v12 = vadd.f32 %v1545_v2, %v1457_v3 }
 0x2d1   : > { %v1458_v5 = vpop.f32.mrf.mxu0  ;;  %v1547_v6 = vpop.f32.mrf.mxu1 }
 0x2d2   : > { %v1459_v8 = vadd.f32 %v2868_v19, %v1458_v5 }
 0x2d4   : > { %v1548_v15 = vadd.f32 %v1547_v6, %v1459_v8 }
 0x2d6   : > { %v2106_v49 = vpack.c.bf16 %v1548_v15, %v1546_v12 }
 0x2d8   : > { %2150 = vst [vmem:[%s2879_s16 + $0x40] sm:$0xff] %v2106_v49  }
 0x2d9   : > { %v1461_v9 = vpop.f32.mrf.mxu0  ;;  %v1550_v56 = vpop.f32.mrf.mxu1 }
 0x2da   : > { %v1462_v10 = vadd.f32 %v2868_v19, %v1461_v9 }
 0x2dc   : > { %v1551_v16 = vadd.f32 %v1550_v56, %v1462_v10 }
 0x2e1   : > { %v1463_v11 = vpop.f32.mrf.mxu0  ;;  %v1552_v13 = vpop.f32.mrf.mxu1 }
 0x2e2   : > { %v1464_v14 = vadd.f32 %v2868_v19, %v1463_v11 }
 0x2e4   : > { %v1553_v18 = vadd.f32 %v1552_v13, %v1464_v14 }
 0x2e6   : > { %v2111_v20 = vpack.c.bf16 %v1553_v18, %v1551_v16 }
 0x2e8   : > { %2151 = vst [vmem:[%s2879_s16 + $0x48] sm:$0xff] %v2111_v20  }
 0x2e9   : > { %v1466_v21 = vpop.f32.mrf.mxu0  ;;  %v1555_v24 = vpop.f32.mrf.mxu1 }
 0x2ea   : > { %v1467_v25 = vadd.f32 %v2868_v19, %v1466_v21 }
 0x2ec   : > { %v1556_v31 = vadd.f32 %v1555_v24, %v1467_v25 }
 0x2f1   : > { %v1468_v27 = vpop.f32.mrf.mxu0  ;;  %v1557_v28 = vpop.f32.mrf.mxu1 }
 0x2f2   : > { %v1469_v29 = vadd.f32 %v2868_v19, %v1468_v27 }
 0x2f4   : > { %v1558_v32 = vadd.f32 %v1557_v28, %v1469_v29 }
 0x2f6   : > { %v2116_v0 = vpack.c.bf16 %v1558_v32, %v1556_v31 }
 0x2f8   : > { %2152 = vst [vmem:[%s2879_s16 + $0x50] sm:$0xff] %v2116_v0  }
 0x2f9   : > { %v1471_v26 = vpop.f32.mrf.mxu0  ;;  %v1560_v30 = vpop.f32.mrf.mxu1 }
 0x2fa   : > { %v1472_v7 = vadd.f32 %v2868_v19, %v1471_v26 }
 0x2fc   : > { %v1561_v39 = vadd.f32 %v1560_v30, %v1472_v7 }
 0x301   : > { %v1473_v33 = vpop.f32.mrf.mxu0  ;;  %v1562_v36 = vpop.f32.mrf.mxu1 }
 0x302   : > { %v1474_v38 = vadd.f32 %v2868_v19, %v1473_v33 }
 0x304   : > { %v1563_v40 = vadd.f32 %v1562_v36, %v1474_v38 }
 0x306   : > { %v2121_v41 = vpack.c.bf16 %v1563_v40, %v1561_v39 }
 0x308   : > { %2153 = vst [vmem:[%s2879_s16 + $0x58] sm:$0xff] %v2121_v41  }
 0x309   : > { %v1476_v42 = vpop.f32.mrf.mxu0  ;;  %v1565_v43 = vpop.f32.mrf.mxu1 }
 0x30a   : > { %v1477_v45 = vadd.f32 %v2868_v19, %v1476_v42 }
 0x30c   : > { %v1566_v4 = vadd.f32 %v1565_v43, %v1477_v45 }
 0x311   : > { %v1478_v1 = vpop.f32.mrf.mxu0  ;;  %v1567_v46 = vpop.f32.mrf.mxu1 }
 0x312   : > { %v1479_v47 = vadd.f32 %v2868_v19, %v1478_v1 }
 0x314   : > { %v1568_v48 = vadd.f32 %v1567_v46, %v1479_v47 }
 0x316   : > { %v2126_v50 = vpack.c.bf16 %v1568_v48, %v1566_v4 }
 0x318   : > { %2154 = vst [vmem:[%s2879_s16 + $0x60] sm:$0xff] %v2126_v50  }
 0x319   : > { %v1481_v17 = vpop.f32.mrf.mxu0  ;;  %v1570_v51 = vpop.f32.mrf.mxu1 }
 0x31a   : > { %v1482_v52 = vadd.f32 %v2868_v19, %v1481_v17 }
 0x31c   : > { %v1571_v44 = vadd.f32 %v1570_v51, %v1482_v52 }
 0x321   : > { %v1483_v58 = vpop.f32.mrf.mxu0  ;;  %v1572_v23 = vpop.f32.mrf.mxu1 }
 0x322   : > { %v1484_v37 = vadd.f32 %v2868_v19, %v1483_v58 }
 0x324   : > { %v1573_v53 = vadd.f32 %v1572_v23, %v1484_v37 }
 0x326   : > { %v2131_v54 = vpack.c.bf16 %v1573_v53, %v1571_v44 }
 0x328   : > { %2155 = vst [vmem:[%s2879_s16 + $0x68] sm:$0xff] %v2131_v54  }
 0x329   : > { %v1486_v55 = vpop.f32.mrf.mxu0  ;;  %v1575_v57 = vpop.f32.mrf.mxu1 }
 0x32a   : > { %v1487_v59 = vadd.f32 %v2868_v19, %v1486_v55 }
 0x32c   : > { %v1576_v35 = vadd.f32 %v1575_v57, %v1487_v59 }
 0x331   : > { %v1488_v60 = vpop.f32.mrf.mxu0  ;;  %v1577_v34 = vpop.f32.mrf.mxu1 }
 0x332   : > { %v1489_v22 = vadd.f32 %v2868_v19, %v1488_v60 }
 0x334   : > { %v1578_v61 = vadd.f32 %v1577_v34, %v1489_v22 }
 0x336   : > { %v2136_v62 = vpack.c.bf16 %v1578_v61, %v1576_v35 }
 0x338   : > { %2156 = vst [vmem:[%s2879_s16 + $0x70] sm:$0xff] %v2136_v62  }
 0x339   : > { %v1491_v63 = vpop.f32.mrf.mxu0 }
 0x33a   : > { %v1492_v5 = vadd.f32 %v2868_v19, %v1491_v63 }
 0x33f   : > { %v1580_v2 = vpop.f32.mrf.mxu3 }
 0x340   : > { %v1581_v12 = vadd.f32 %v1580_v2, %v1492_v5 }
 0x341   : > { %v1493_v3 = vpop.f32.mrf.mxu0 }
 0x342   : > { %v1494_v6 = vadd.f32 %v2868_v19, %v1493_v3 }
 0x347   : > { %v1582_v8 = vpop.f32.mrf.mxu3 }
 0x348   : > { %v1583_v15 = vadd.f32 %v1582_v8, %v1494_v6 }
 0x34a   : > { %v2141_v49 = vpack.c.bf16 %v1583_v15, %v1581_v12 }
 0x34c   : > { %2157 = vst [vmem:[%s2879_s16 + $0x78] sm:$0xff] %v2141_v49  }
 0x34d   : > { %2325 = shalt.err (!%p2322_p8)
}
 0x34e   : > { %s2374_s29 = smov 64   ;;  %s2375_s16 = smov 4  }
 0x34f   : > { %2179 = dma.vmem_to_hbm [thread:$0]  (%p2464_p5), %s1663_s25, 2048, %s1665_s21, %s1650_s13, %s2374_s29, %s2374_s29, %s2375_s16  }
 0x350 PF: > { %p2196_p9 = scmp.ge.s32.totalorder %s2368_s12, 2  ;;  %s1679_s24 = sand.u32 1, %s2356_s30  }
 0x351   : > { %s1680_s28 = scalar_lea.sflag [#allocation4], %s1679_s24 }
 0x352   : > { %p2189_p10 = pnand %p2196_p9, %p2468_p6 }
 0x354   : > { %p2190_p11 = pneg %p2189_p10 }
 0x356   : > { %2351 = dma.done.wait (%p2190_p11), %s1680_s28, 2048  }
 0x357   : > { %2353 = vsyncadd (%p2190_p11), %s1680_s28, 4294965248  ;;  %p21_p12 = scmp.ge.s32.totalorder %s2451_s15, 4   ;;  %s2998_s30 = smov %s2360_s10 }
 0x358   : > { %s2999_s10 = smov %s2364_s11  ;;  %s3000_s11 = smov %s2462_s18 }
 0x359   : > { %s3001_s12 = smov %s2451_s15  ;;  %23 = sbr.rel (!%p21_p12) target bundleno = 5 (0x5), region = 100 }
 0x35e   :  { %1686 = vsyncpa [#allocation3], 1 }
 0x35f   :  { %1688 = vsyncpa [#allocation3 + $0x1], 1 }
 0x360   :  { %1689 = vsyncpa [#allocation6], 1 }
 0x361   :  { %1690 = vsyncpa [#allocation4], 1 }
 0x362   :  { %1692 = vsyncpa [#allocation4 + $0x1], 1 }

</bundles_post_ra>
